<compile_context>
chip_gen: v7x
topology: tpu7x:2x2x1
jax: 0.10.0
libtpu: 0.0.40
codegen_flags: <defaults>
</compile_context>

<pallas_src>
import math
import jax
import jax.numpy as jnp
from jax.experimental import pallas as pl
from jax.experimental.pallas import tpu as pltpu

# ---- scaled-down ViT-B/16-style config (structure preserved, sizes shrunk) ----
PATCH = 16          # vit_b_16 patch size
IMG = 32            # 2x2 = 4 patches
IN_CH = 4           # RGBD (module replaces 3-ch conv_proj with 4-ch)
EMBED = 64          # vit_b_16: 768
HEADS = 4           # vit_b_16: 12
HEAD_DIM = EMBED // HEADS
MLP = 128           # vit_b_16: 3072
LAYERS = 2          # vit_b_16: 12
NUM_CLASSES = 10
BATCH = 2
LN_EPS = 1e-6       # torchvision ViT LayerNorm eps

N_PATCHES = (IMG // PATCH) ** 2          # 4
SEQ = N_PATCHES + 1                      # 5 (cls + patches)
TOK = BATCH * SEQ                        # 10 (batch folded into the sublane axis)
PATCH_DIM = IN_CH * PATCH * PATCH        # 1024
LOGIT_PAD = 128                          # lane-dense padded logits

# packed matmul-weight slab layout (bf16, lane width 192)
MAT_W = 3 * EMBED                        # 192
MAT_ROWS_PER_LAYER = 3 * EMBED + MLP     # qkv(64) + out(64) + mlp1(64) + mlp2(128) = 320
HEAD_ROW = LAYERS * MAT_ROWS_PER_LAYER   # 640

# packed vector slab layout (f32, lane width 192)
VEC_W = MAT_W
VEC_LAYER_BASE = 2 * TOK                 # rows 0..9 pos_fold(tiled), 10..19 attention mask
VEC_ROWS_PER_LAYER = 8                   # ln1_g, ln1_b, qkv_b, out_b, ln2_g, ln2_b, mlp_b1, mlp_b2
VEC_FINAL_BASE = VEC_LAYER_BASE + LAYERS * VEC_ROWS_PER_LAYER   # lnf_g, lnf_b, head_b


# ---------------- fused forward-pass kernel ----------------

def _fused_vit_kernel(tokens_ref, conv_w_ref, mat_ref, vec_ref, out_ref):
    f32 = jnp.float32
    bf16 = jnp.bfloat16

    def vrow(r, w):                       # (1, w) f32 row from the vector slab (static slice)
        return vec_ref[r:r + 1, 0:w]

    def layernorm(x, g, b):
        mean = jnp.mean(x, axis=-1, keepdims=True)
        xc = x - mean
        var = jnp.mean(xc * xc, axis=-1, keepdims=True)
        return xc * jax.lax.rsqrt(var + LN_EPS) * g + b

    # --- patch projection + folded (cls, conv_b, pos) embedding ---
    tok = tokens_ref[...].astype(bf16)                                       # (TOK, PATCH_DIM)
    h = jnp.dot(tok, conv_w_ref[...], preferred_element_type=f32)            # (TOK, EMBED)
    h = h + vec_ref[0:TOK, 0:EMBED]              # pos table with cls token & conv bias folded in
    mask = vec_ref[TOK:2 * TOK, 0:TOK]           # block-diagonal additive mask (batch folding)

    scale = 1.0 / math.sqrt(HEAD_DIM)
    for l in range(LAYERS):
        mb = l * MAT_ROWS_PER_LAYER
        vb = VEC_LAYER_BASE + l * VEC_ROWS_PER_LAYER
        qkv_w = mat_ref[mb:mb + EMBED, 0:3 * EMBED]                          # (64, 192) bf16
        out_w = mat_ref[mb + EMBED:mb + 2 * EMBED, 0:EMBED]                  # (64, 64)
        w1 = mat_ref[mb + 2 * EMBED:mb + 3 * EMBED, 0:MLP]                   # (64, 128)
        w2 = mat_ref[mb + 3 * EMBED:mb + 3 * EMBED + MLP, 0:EMBED]           # (128, 64)

        # --- self-attention block:  x = x + MHA(LN1(x)) ---
        y = layernorm(h, vrow(vb, EMBED), vrow(vb + 1, EMBED)).astype(bf16)
        qkv = jnp.dot(y, qkv_w, preferred_element_type=f32) + vrow(vb + 2, 3 * EMBED)  # (TOK,192)
        heads = []
        for hd in range(HEADS):
            q = qkv[:, hd * HEAD_DIM:(hd + 1) * HEAD_DIM].astype(bf16)
            k = qkv[:, EMBED + hd * HEAD_DIM:EMBED + (hd + 1) * HEAD_DIM].astype(bf16)
            v = qkv[:, 2 * EMBED + hd * HEAD_DIM:2 * EMBED + (hd + 1) * HEAD_DIM].astype(bf16)
            s = jax.lax.dot_general(q, k, (((1,), (1,)), ((), ())),
                                    preferred_element_type=f32) * scale + mask
            m = jnp.max(s, axis=-1, keepdims=True)
            p = jnp.exp(s - m)
            p = p / jnp.sum(p, axis=-1, keepdims=True)       # exact division (tiny, per review)
            heads.append(jnp.dot(p.astype(bf16), v, preferred_element_type=f32))    # (TOK, 16)
        attn = jnp.concatenate(heads, axis=-1).astype(bf16)                          # (TOK, 64)
        h = h + jnp.dot(attn, out_w, preferred_element_type=f32) + vrow(vb + 3, EMBED)

        # --- MLP block:  x = x + MLP(LN2(x)) ---
        y = layernorm(h, vrow(vb + 4, EMBED), vrow(vb + 5, EMBED)).astype(bf16)
        m1 = jnp.dot(y, w1, preferred_element_type=f32) + vrow(vb + 6, MLP)
        # tanh-approx GELU (EUP tanh slot); small numeric deviation vs torch's exact erf-GELU
        m1 = 0.5 * m1 * (1.0 + jnp.tanh(0.7978845608028654 * (m1 + 0.044715 * m1 * m1 * m1)))
        h = h + jnp.dot(m1.astype(bf16), w2, preferred_element_type=f32) + vrow(vb + 7, EMBED)

    # --- final LN (cls rows only) + classification head (lane-dense, padded to 128) ---
    cls = jnp.concatenate([h[b * SEQ:b * SEQ + 1, :] for b in range(BATCH)], axis=0)  # (B, E)
    cls = layernorm(cls, vrow(VEC_FINAL_BASE, EMBED),
                    vrow(VEC_FINAL_BASE + 1, EMBED)).astype(bf16)
    head_w = mat_ref[HEAD_ROW:HEAD_ROW + EMBED, 0:LOGIT_PAD]                          # (64, 128)
    logits = jnp.dot(cls, head_w, preferred_element_type=f32) + vrow(VEC_FINAL_BASE + 2, LOGIT_PAD)
    out_ref[...] = logits.astype(out_ref.dtype)


# ---------------- parameter init (deterministic, synthetic) ----------------

def init_params(key):
    def nrm(k, shape, scale=0.02):
        return (scale * jax.random.normal(k, shape)).astype(jnp.float32)

    keys = jax.random.split(key, 8 + LAYERS)

    # conv_proj: mimic __init__ — 3 "RGB" channels + 4th channel = mean of the first three.
    w_rgb = nrm(keys[0], (EMBED, 3, PATCH, PATCH))
    w_d = jnp.mean(w_rgb, axis=1, keepdims=True)
    w_full = jnp.concatenate([w_rgb, w_d], axis=1)             # (EMBED, 4, P, P) — Conv2d layout
    conv_w = w_full.reshape(EMBED, PATCH_DIM).T                # (C*P*P, EMBED) for x @ W

    params = {
        "conv_w": conv_w,
        "conv_b": nrm(keys[1], (EMBED,)),
        "cls":    nrm(keys[2], (1, EMBED)),
        "pos":    nrm(keys[3], (SEQ, EMBED)),
        "ln_g":   jnp.ones((EMBED,), jnp.float32),
        "ln_b":   jnp.zeros((EMBED,), jnp.float32),
        "head_w": nrm(keys[4], (EMBED, NUM_CLASSES)),
        "head_b": jnp.zeros((NUM_CLASSES,), jnp.float32),
        "layers": [],
    }
    for l in range(LAYERS):
        lk = jax.random.split(keys[8 + l], 8)
        params["layers"].append({
            "ln1_g": jnp.ones((EMBED,), jnp.float32),
            "ln1_b": jnp.zeros((EMBED,), jnp.float32),
            # columns ordered [Q | K | V], each EMBED wide with HEAD_DIM-contiguous head blocks
            # (the x @ in_proj_weight.T view of torch's packed MultiheadAttention projection)
            "qkv_w": nrm(lk[0], (EMBED, 3 * EMBED)),
            "qkv_b": nrm(lk[1], (3 * EMBED,)),
            "out_w": nrm(lk[2], (EMBED, EMBED)),
            "out_b": nrm(lk[3], (EMBED,)),
            "ln2_g": jnp.ones((EMBED,), jnp.float32),
            "ln2_b": jnp.zeros((EMBED,), jnp.float32),
            "mlp_w1": nrm(lk[4], (EMBED, MLP)),
            "mlp_b1": nrm(lk[5], (MLP,)),
            "mlp_w2": nrm(lk[6], (MLP, EMBED)),
            "mlp_b2": nrm(lk[7], (EMBED,)),
        })
    return params


def pack_params(params):
    """Pack ~41 parameter tensors into 3 contiguous slabs (one DMA each):
       conv_w (bf16), mat_slab (bf16 matmul weights, width 192), vec_slab (f32 pos/mask/LN/bias)."""
    f32, bf16 = jnp.float32, jnp.bfloat16

    def padw(a, w):
        return jnp.pad(a, ((0, 0), (0, w - a.shape[1])))

    # fold cls token and conv bias into the positional table; tile over batch (host-side, free)
    pos = params["pos"]
    pos_fold = jnp.concatenate([pos[0:1] + params["cls"],
                                pos[1:] + params["conv_b"].reshape(1, EMBED)], axis=0)
    pos_tiled = jnp.tile(pos_fold, (BATCH, 1))                                    # (TOK, EMBED)

    # block-diagonal additive attention mask for the batch-folded token axis
    ids = jnp.arange(TOK) // SEQ
    mask = jnp.where(ids[:, None] == ids[None, :], 0.0, -1e30).astype(f32)        # (TOK, TOK)

    mat_rows, vec_rows = [], []
    vec_rows.append(padw(pos_tiled, VEC_W))
    vec_rows.append(padw(mask, VEC_W))

    for lyr in params["layers"]:
        mat_rows += [padw(lyr["qkv_w"], MAT_W), padw(lyr["out_w"], MAT_W),
                     padw(lyr["mlp_w1"], MAT_W), padw(lyr["mlp_w2"], MAT_W)]
        vec_rows += [padw(lyr["ln1_g"].reshape(1, EMBED), VEC_W),
                     padw(lyr["ln1_b"].reshape(1, EMBED), VEC_W),
                     padw(lyr["qkv_b"].reshape(1, 3 * EMBED), VEC_W),
                     padw(lyr["out_b"].reshape(1, EMBED), VEC_W),
                     padw(lyr["ln2_g"].reshape(1, EMBED), VEC_W),
                     padw(lyr["ln2_b"].reshape(1, EMBED), VEC_W),
                     padw(lyr["mlp_b1"].reshape(1, MLP), VEC_W),
                     padw(lyr["mlp_b2"].reshape(1, EMBED), VEC_W)]

    # classification head zero-padded to 128 lanes -> lane-dense logits, sliced in the wrapper
    mat_rows.append(padw(padw(params["head_w"], LOGIT_PAD), MAT_W))
    vec_rows += [padw(params["ln_g"].reshape(1, EMBED), VEC_W),
                 padw(params["ln_b"].reshape(1, EMBED), VEC_W),
                 padw(params["head_b"].reshape(1, NUM_CLASSES), VEC_W)]

    conv_w = params["conv_w"].astype(bf16)                          # (1024, 64)
    mat_slab = jnp.concatenate(mat_rows, axis=0).astype(bf16)       # (704, 192)
    vec_slab = jnp.concatenate(vec_rows, axis=0).astype(f32)        # (39, 192)
    return conv_w, mat_slab, vec_slab


# ---------------- forward pass (torchvision VisionTransformer semantics, eval/dropout=0) ----------------

def vit_forward(packed, x):
    conv_w, mat_slab, vec_slab = packed
    B, C, H, W = x.shape
    hp, wp = H // PATCH, W // PATCH

    # conv_proj with stride==kernel -> patchify (pure layout glue); projection runs in-kernel.
    patches = (x.reshape(B, C, hp, PATCH, wp, PATCH)
                 .transpose(0, 2, 4, 1, 3, 5)
                 .reshape(B, hp * wp, C * PATCH * PATCH))
    # zero row at each image's cls position (projects to 0; cls/pos/conv_b folded in vec_slab),
    # then fold batch into the sublane axis -> single grid step on single-TC chips.
    tokens = jnp.pad(patches, ((0, 0), (1, 0), (0, 0))).reshape(B * SEQ, PATCH_DIM)

    out = pl.pallas_call(
        _fused_vit_kernel,
        grid=(1,),
        in_specs=[
            pl.BlockSpec(tokens.shape, lambda i: (0, 0)),
            pl.BlockSpec(conv_w.shape, lambda i: (0, 0)),
            pl.BlockSpec(mat_slab.shape, lambda i: (0, 0)),
            pl.BlockSpec(vec_slab.shape, lambda i: (0, 0)),
        ],
        out_specs=pl.BlockSpec((B, LOGIT_PAD), lambda i: (0, 0)),
        out_shape=jax.ShapeDtypeStruct((B, LOGIT_PAD), jnp.float32),
        compiler_params=pltpu.CompilerParams(dimension_semantics=("arbitrary",)),
    )(tokens, conv_w, mat_slab, vec_slab)
    return out[:, :NUM_CLASSES]


if __name__ == "__main__":
    key = jax.random.PRNGKey(0)
    pkey, xkey = jax.random.split(key)
    params = init_params(pkey)
    packed = pack_params(params)
    x = jax.random.normal(xkey, (BATCH, IN_CH, IMG, IMG), dtype=jnp.float32)   # NCHW RGBD input

    logits = jax.jit(vit_forward)(packed, x)
    jax.block_until_ready(logits)
    assert logits.shape == (BATCH, NUM_CLASSES)
    assert bool(jnp.all(jnp.isfinite(logits)))
    print("KERNEL_OK")
</pallas_src>

<mosaic_0001>
module attributes {stable_mosaic.version = 11 : i64} {
  func.func @_fused_vit_kernel(%arg0: i32, %arg1: memref<10x1024xf32, #tpu.memory_space<vmem>>, %arg2: memref<1024x64xbf16, #tpu.memory_space<vmem>>, %arg3: memref<704x192xbf16, #tpu.memory_space<vmem>>, %arg4: memref<39x192xf32, #tpu.memory_space<vmem>>, %arg5: memref<2x128xf32, #tpu.memory_space<vmem>>) attributes {dimension_semantics = [#tpu.dimension_semantics<arbitrary>], iteration_bounds = array<i64: 1>, scalar_prefetch = 0 : i64, scratch_operands = 0 : i64, tpu.core_type = #tpu.core_type<tc>, window_params = [{pipeline_mode = #tpu.pipeline_mode<synchronous>, transform_indices = @transform_0, window_bounds = array<i64: 10, 1024>}, {pipeline_mode = #tpu.pipeline_mode<synchronous>, transform_indices = @transform_1, window_bounds = array<i64: 1024, 64>}, {pipeline_mode = #tpu.pipeline_mode<synchronous>, transform_indices = @transform_2, window_bounds = array<i64: 704, 192>}, {pipeline_mode = #tpu.pipeline_mode<synchronous>, transform_indices = @transform_3, window_bounds = array<i64: 39, 192>}, {pipeline_mode = #tpu.pipeline_mode<synchronous>, transform_indices = @transform_4, window_bounds = array<i64: 2, 128>}]} {
    %c0 = arith.constant 0 : index
    %c0_0 = arith.constant 0 : index
    %0 = vector.load %arg1[%c0, %c0_0] : memref<10x1024xf32, #tpu.memory_space<vmem>>, vector<10x1024xf32>
    %1 = arith.truncf %0 : vector<10x1024xf32> to vector<10x1024xbf16>
    %c0_1 = arith.constant 0 : index
    %c0_2 = arith.constant 0 : index
    %2 = vector.load %arg2[%c0_1, %c0_2] : memref<1024x64xbf16, #tpu.memory_space<vmem>>, vector<1024x64xbf16>
    %cst = arith.constant dense<0.000000e+00> : vector<10x64xf32>
    %3 = tpu.matmul %1, %2, %cst {dimension_numbers = #tpu.dot_dimension_numbers<[1], [0], [0], [1], [0, 0, 1, 1], [], []>} : vector<10x1024xbf16>, vector<1024x64xbf16>, vector<10x64xf32> -> vector<10x64xf32>
    %c0_3 = arith.constant 0 : index
    %c0_4 = arith.constant 0 : index
    %4 = vector.load %arg4[%c0_3, %c0_4] : memref<39x192xf32, #tpu.memory_space<vmem>>, vector<10x64xf32>
    %5 = arith.addf %3, %4 : vector<10x64xf32>
    %c10 = arith.constant 10 : index
    %c0_5 = arith.constant 0 : index
    %6 = vector.load %arg4[%c10, %c0_5] : memref<39x192xf32, #tpu.memory_space<vmem>>, vector<10x10xf32>
    %c0_6 = arith.constant 0 : index
    %c0_7 = arith.constant 0 : index
    %7 = vector.load %arg3[%c0_6, %c0_7] : memref<704x192xbf16, #tpu.memory_space<vmem>>, vector<64x192xbf16>
    %c64 = arith.constant 64 : index
    %c0_8 = arith.constant 0 : index
    %8 = vector.load %arg3[%c64, %c0_8] : memref<704x192xbf16, #tpu.memory_space<vmem>>, vector<64x64xbf16>
    %c128 = arith.constant 128 : index
    %c0_9 = arith.constant 0 : index
    %9 = vector.load %arg3[%c128, %c0_9] : memref<704x192xbf16, #tpu.memory_space<vmem>>, vector<64x128xbf16>
    %c192 = arith.constant 192 : index
    %c0_10 = arith.constant 0 : index
    %10 = vector.load %arg3[%c192, %c0_10] : memref<704x192xbf16, #tpu.memory_space<vmem>>, vector<128x64xbf16>
    %c20 = arith.constant 20 : index
    %c0_11 = arith.constant 0 : index
    %11 = vector.load %arg4[%c20, %c0_11] : memref<39x192xf32, #tpu.memory_space<vmem>>, vector<1x64xf32>
    %c21 = arith.constant 21 : index
    %c0_12 = arith.constant 0 : index
    %12 = vector.load %arg4[%c21, %c0_12] : memref<39x192xf32, #tpu.memory_space<vmem>>, vector<1x64xf32>
    %cst_13 = arith.constant dense<0.000000e+00> : vector<10xf32>
    %13 = vector.multi_reduction <add>, %5, %cst_13 [1] : vector<10x64xf32> to vector<10xf32>
    %14 = vector.shape_cast %13 : vector<10xf32> to vector<10x1xf32>
    %cst_14 = arith.constant 6.400000e+01 : f32
    %15 = vector.broadcast %cst_14 : f32 to vector<10x1xf32>
    %16 = arith.divf %14, %15 : vector<10x1xf32>
    %17 = vector.broadcast %16 : vector<10x1xf32> to vector<10x64xf32>
    %18 = arith.subf %5, %17 : vector<10x64xf32>
    %19 = arith.mulf %18, %18 : vector<10x64xf32>
    %cst_15 = arith.constant dense<0.000000e+00> : vector<10xf32>
    %20 = vector.multi_reduction <add>, %19, %cst_15 [1] : vector<10x64xf32> to vector<10xf32>
    %21 = vector.shape_cast %20 : vector<10xf32> to vector<10x1xf32>
    %cst_16 = arith.constant 6.400000e+01 : f32
    %22 = vector.broadcast %cst_16 : f32 to vector<10x1xf32>
    %23 = arith.divf %21, %22 : vector<10x1xf32>
    %cst_17 = arith.constant 9.99999997E-7 : f32
    %24 = vector.broadcast %cst_17 : f32 to vector<10x1xf32>
    %25 = arith.addf %23, %24 : vector<10x1xf32>
    %26 = math.rsqrt %25 : vector<10x1xf32>
    %27 = vector.broadcast %26 : vector<10x1xf32> to vector<10x64xf32>
    %28 = arith.mulf %18, %27 : vector<10x64xf32>
    %29 = vector.broadcast %11 : vector<1x64xf32> to vector<10x64xf32>
    %30 = arith.mulf %28, %29 : vector<10x64xf32>
    %31 = vector.broadcast %12 : vector<1x64xf32> to vector<10x64xf32>
    %32 = arith.addf %30, %31 : vector<10x64xf32>
    %33 = arith.truncf %32 : vector<10x64xf32> to vector<10x64xbf16>
    %cst_18 = arith.constant dense<0.000000e+00> : vector<10x192xf32>
    %34 = tpu.matmul %33, %7, %cst_18 {dimension_numbers = #tpu.dot_dimension_numbers<[1], [0], [0], [1], [0, 0, 1, 1], [], []>} : vector<10x64xbf16>, vector<64x192xbf16>, vector<10x192xf32> -> vector<10x192xf32>
    %c22 = arith.constant 22 : index
    %c0_19 = arith.constant 0 : index
    %35 = vector.load %arg4[%c22, %c0_19] : memref<39x192xf32, #tpu.memory_space<vmem>>, vector<1x192xf32>
    %36 = vector.broadcast %35 : vector<1x192xf32> to vector<10x192xf32>
    %37 = arith.addf %34, %36 : vector<10x192xf32>
    %38 = vector.extract_strided_slice %37 {offsets = [0, 0], sizes = [10, 16], strides = [1, 1]} : vector<10x192xf32> to vector<10x16xf32>
    %39 = arith.truncf %38 : vector<10x16xf32> to vector<10x16xbf16>
    %40 = vector.extract_strided_slice %37 {offsets = [0, 64], sizes = [10, 16], strides = [1, 1]} : vector<10x192xf32> to vector<10x16xf32>
    %41 = arith.truncf %40 : vector<10x16xf32> to vector<10x16xbf16>
    %42 = vector.extract_strided_slice %37 {offsets = [0, 128], sizes = [10, 16], strides = [1, 1]} : vector<10x192xf32> to vector<10x16xf32>
    %43 = arith.truncf %42 : vector<10x16xf32> to vector<10x16xbf16>
    %cst_20 = arith.constant dense<0.000000e+00> : vector<10x10xf32>
    %44 = tpu.matmul %39, %41, %cst_20 {dimension_numbers = #tpu.dot_dimension_numbers<[1], [1], [0], [0], [0, 0, 1, 0], [], []>} : vector<10x16xbf16>, vector<10x16xbf16>, vector<10x10xf32> -> vector<10x10xf32>
    %cst_21 = arith.constant 2.500000e-01 : f32
    %45 = vector.broadcast %cst_21 : f32 to vector<10x10xf32>
    %46 = arith.mulf %44, %45 : vector<10x10xf32>
    %47 = arith.addf %46, %6 : vector<10x10xf32>
    %cst_22 = arith.constant dense<0xFF800000> : vector<10xf32>
    %48 = vector.multi_reduction <maximumf>, %47, %cst_22 [1] : vector<10x10xf32> to vector<10xf32>
    %49 = vector.shape_cast %48 : vector<10xf32> to vector<10x1xf32>
    %50 = vector.broadcast %49 : vector<10x1xf32> to vector<10x10xf32>
    %51 = arith.subf %47, %50 : vector<10x10xf32>
    %52 = math.exp %51 : vector<10x10xf32>
    %cst_23 = arith.constant dense<0.000000e+00> : vector<10xf32>
    %53 = vector.multi_reduction <add>, %52, %cst_23 [1] : vector<10x10xf32> to vector<10xf32>
    %54 = vector.shape_cast %53 : vector<10xf32> to vector<10x1xf32>
    %55 = vector.broadcast %54 : vector<10x1xf32> to vector<10x10xf32>
    %56 = arith.divf %52, %55 : vector<10x10xf32>
    %57 = arith.truncf %56 : vector<10x10xf32> to vector<10x10xbf16>
    %cst_24 = arith.constant dense<0.000000e+00> : vector<10x16xf32>
    %58 = tpu.matmul %57, %43, %cst_24 {dimension_numbers = #tpu.dot_dimension_numbers<[1], [0], [0], [1], [0, 0, 1, 1], [], []>} : vector<10x10xbf16>, vector<10x16xbf16>, vector<10x16xf32> -> vector<10x16xf32>
    %59 = vector.extract_strided_slice %37 {offsets = [0, 16], sizes = [10, 16], strides = [1, 1]} : vector<10x192xf32> to vector<10x16xf32>
    %60 = arith.truncf %59 : vector<10x16xf32> to vector<10x16xbf16>
    %61 = vector.extract_strided_slice %37 {offsets = [0, 80], sizes = [10, 16], strides = [1, 1]} : vector<10x192xf32> to vector<10x16xf32>
    %62 = arith.truncf %61 : vector<10x16xf32> to vector<10x16xbf16>
    %63 = vector.extract_strided_slice %37 {offsets = [0, 144], sizes = [10, 16], strides = [1, 1]} : vector<10x192xf32> to vector<10x16xf32>
    %64 = arith.truncf %63 : vector<10x16xf32> to vector<10x16xbf16>
    %cst_25 = arith.constant dense<0.000000e+00> : vector<10x10xf32>
    %65 = tpu.matmul %60, %62, %cst_25 {dimension_numbers = #tpu.dot_dimension_numbers<[1], [1], [0], [0], [0, 0, 1, 0], [], []>} : vector<10x16xbf16>, vector<10x16xbf16>, vector<10x10xf32> -> vector<10x10xf32>
    %cst_26 = arith.constant 2.500000e-01 : f32
    %66 = vector.broadcast %cst_26 : f32 to vector<10x10xf32>
    %67 = arith.mulf %65, %66 : vector<10x10xf32>
    %68 = arith.addf %67, %6 : vector<10x10xf32>
    %cst_27 = arith.constant dense<0xFF800000> : vector<10xf32>
    %69 = vector.multi_reduction <maximumf>, %68, %cst_27 [1] : vector<10x10xf32> to vector<10xf32>
    %70 = vector.shape_cast %69 : vector<10xf32> to vector<10x1xf32>
    %71 = vector.broadcast %70 : vector<10x1xf32> to vector<10x10xf32>
    %72 = arith.subf %68, %71 : vector<10x10xf32>
    %73 = math.exp %72 : vector<10x10xf32>
    %cst_28 = arith.constant dense<0.000000e+00> : vector<10xf32>
    %74 = vector.multi_reduction <add>, %73, %cst_28 [1] : vector<10x10xf32> to vector<10xf32>
    %75 = vector.shape_cast %74 : vector<10xf32> to vector<10x1xf32>
    %76 = vector.broadcast %75 : vector<10x1xf32> to vector<10x10xf32>
    %77 = arith.divf %73, %76 : vector<10x10xf32>
    %78 = arith.truncf %77 : vector<10x10xf32> to vector<10x10xbf16>
    %cst_29 = arith.constant dense<0.000000e+00> : vector<10x16xf32>
    %79 = tpu.matmul %78, %64, %cst_29 {dimension_numbers = #tpu.dot_dimension_numbers<[1], [0], [0], [1], [0, 0, 1, 1], [], []>} : vector<10x10xbf16>, vector<10x16xbf16>, vector<10x16xf32> -> vector<10x16xf32>
    %80 = vector.extract_strided_slice %37 {offsets = [0, 32], sizes = [10, 16], strides = [1, 1]} : vector<10x192xf32> to vector<10x16xf32>
    %81 = arith.truncf %80 : vector<10x16xf32> to vector<10x16xbf16>
    %82 = vector.extract_strided_slice %37 {offsets = [0, 96], sizes = [10, 16], strides = [1, 1]} : vector<10x192xf32> to vector<10x16xf32>
    %83 = arith.truncf %82 : vector<10x16xf32> to vector<10x16xbf16>
    %84 = vector.extract_strided_slice %37 {offsets = [0, 160], sizes = [10, 16], strides = [1, 1]} : vector<10x192xf32> to vector<10x16xf32>
    %85 = arith.truncf %84 : vector<10x16xf32> to vector<10x16xbf16>
    %cst_30 = arith.constant dense<0.000000e+00> : vector<10x10xf32>
    %86 = tpu.matmul %81, %83, %cst_30 {dimension_numbers = #tpu.dot_dimension_numbers<[1], [1], [0], [0], [0, 0, 1, 0], [], []>} : vector<10x16xbf16>, vector<10x16xbf16>, vector<10x10xf32> -> vector<10x10xf32>
    %cst_31 = arith.constant 2.500000e-01 : f32
    %87 = vector.broadcast %cst_31 : f32 to vector<10x10xf32>
    %88 = arith.mulf %86, %87 : vector<10x10xf32>
    %89 = arith.addf %88, %6 : vector<10x10xf32>
    %cst_32 = arith.constant dense<0xFF800000> : vector<10xf32>
    %90 = vector.multi_reduction <maximumf>, %89, %cst_32 [1] : vector<10x10xf32> to vector<10xf32>
    %91 = vector.shape_cast %90 : vector<10xf32> to vector<10x1xf32>
    %92 = vector.broadcast %91 : vector<10x1xf32> to vector<10x10xf32>
    %93 = arith.subf %89, %92 : vector<10x10xf32>
    %94 = math.exp %93 : vector<10x10xf32>
    %cst_33 = arith.constant dense<0.000000e+00> : vector<10xf32>
    %95 = vector.multi_reduction <add>, %94, %cst_33 [1] : vector<10x10xf32> to vector<10xf32>
    %96 = vector.shape_cast %95 : vector<10xf32> to vector<10x1xf32>
    %97 = vector.broadcast %96 : vector<10x1xf32> to vector<10x10xf32>
    %98 = arith.divf %94, %97 : vector<10x10xf32>
    %99 = arith.truncf %98 : vector<10x10xf32> to vector<10x10xbf16>
    %cst_34 = arith.constant dense<0.000000e+00> : vector<10x16xf32>
    %100 = tpu.matmul %99, %85, %cst_34 {dimension_numbers = #tpu.dot_dimension_numbers<[1], [0], [0], [1], [0, 0, 1, 1], [], []>} : vector<10x10xbf16>, vector<10x16xbf16>, vector<10x16xf32> -> vector<10x16xf32>
    %101 = vector.extract_strided_slice %37 {offsets = [0, 48], sizes = [10, 16], strides = [1, 1]} : vector<10x192xf32> to vector<10x16xf32>
    %102 = arith.truncf %101 : vector<10x16xf32> to vector<10x16xbf16>
    %103 = vector.extract_strided_slice %37 {offsets = [0, 112], sizes = [10, 16], strides = [1, 1]} : vector<10x192xf32> to vector<10x16xf32>
    %104 = arith.truncf %103 : vector<10x16xf32> to vector<10x16xbf16>
    %105 = vector.extract_strided_slice %37 {offsets = [0, 176], sizes = [10, 16], strides = [1, 1]} : vector<10x192xf32> to vector<10x16xf32>
    %106 = arith.truncf %105 : vector<10x16xf32> to vector<10x16xbf16>
    %cst_35 = arith.constant dense<0.000000e+00> : vector<10x10xf32>
    %107 = tpu.matmul %102, %104, %cst_35 {dimension_numbers = #tpu.dot_dimension_numbers<[1], [1], [0], [0], [0, 0, 1, 0], [], []>} : vector<10x16xbf16>, vector<10x16xbf16>, vector<10x10xf32> -> vector<10x10xf32>
    %cst_36 = arith.constant 2.500000e-01 : f32
    %108 = vector.broadcast %cst_36 : f32 to vector<10x10xf32>
    %109 = arith.mulf %107, %108 : vector<10x10xf32>
    %110 = arith.addf %109, %6 : vector<10x10xf32>
    %cst_37 = arith.constant dense<0xFF800000> : vector<10xf32>
    %111 = vector.multi_reduction <maximumf>, %110, %cst_37 [1] : vector<10x10xf32> to vector<10xf32>
    %112 = vector.shape_cast %111 : vector<10xf32> to vector<10x1xf32>
    %113 = vector.broadcast %112 : vector<10x1xf32> to vector<10x10xf32>
    %114 = arith.subf %110, %113 : vector<10x10xf32>
    %115 = math.exp %114 : vector<10x10xf32>
    %cst_38 = arith.constant dense<0.000000e+00> : vector<10xf32>
    %116 = vector.multi_reduction <add>, %115, %cst_38 [1] : vector<10x10xf32> to vector<10xf32>
    %117 = vector.shape_cast %116 : vector<10xf32> to vector<10x1xf32>
    %118 = vector.broadcast %117 : vector<10x1xf32> to vector<10x10xf32>
    %119 = arith.divf %115, %118 : vector<10x10xf32>
    %120 = arith.truncf %119 : vector<10x10xf32> to vector<10x10xbf16>
    %cst_39 = arith.constant dense<0.000000e+00> : vector<10x16xf32>
    %121 = tpu.matmul %120, %106, %cst_39 {dimension_numbers = #tpu.dot_dimension_numbers<[1], [0], [0], [1], [0, 0, 1, 1], [], []>} : vector<10x10xbf16>, vector<10x16xbf16>, vector<10x16xf32> -> vector<10x16xf32>
    %122 = tpu.concatenate %58, %79, %100, %121 in 1 : vector<10x16xf32>, vector<10x16xf32>, vector<10x16xf32>, vector<10x16xf32> -> vector<10x64xf32>
    %123 = arith.truncf %122 : vector<10x64xf32> to vector<10x64xbf16>
    %cst_40 = arith.constant dense<0.000000e+00> : vector<10x64xf32>
    %124 = tpu.matmul %123, %8, %cst_40 {dimension_numbers = #tpu.dot_dimension_numbers<[1], [0], [0], [1], [0, 0, 1, 1], [], []>} : vector<10x64xbf16>, vector<64x64xbf16>, vector<10x64xf32> -> vector<10x64xf32>
    %125 = arith.addf %5, %124 : vector<10x64xf32>
    %c23 = arith.constant 23 : index
    %c0_41 = arith.constant 0 : index
    %126 = vector.load %arg4[%c23, %c0_41] : memref<39x192xf32, #tpu.memory_space<vmem>>, vector<1x64xf32>
    %127 = vector.broadcast %126 : vector<1x64xf32> to vector<10x64xf32>
    %128 = arith.addf %125, %127 : vector<10x64xf32>
    %c24 = arith.constant 24 : index
    %c0_42 = arith.constant 0 : index
    %129 = vector.load %arg4[%c24, %c0_42] : memref<39x192xf32, #tpu.memory_space<vmem>>, vector<1x64xf32>
    %c25 = arith.constant 25 : index
    %c0_43 = arith.constant 0 : index
    %130 = vector.load %arg4[%c25, %c0_43] : memref<39x192xf32, #tpu.memory_space<vmem>>, vector<1x64xf32>
    %cst_44 = arith.constant dense<0.000000e+00> : vector<10xf32>
    %131 = vector.multi_reduction <add>, %128, %cst_44 [1] : vector<10x64xf32> to vector<10xf32>
    %132 = vector.shape_cast %131 : vector<10xf32> to vector<10x1xf32>
    %cst_45 = arith.constant 6.400000e+01 : f32
    %133 = vector.broadcast %cst_45 : f32 to vector<10x1xf32>
    %134 = arith.divf %132, %133 : vector<10x1xf32>
    %135 = vector.broadcast %134 : vector<10x1xf32> to vector<10x64xf32>
    %136 = arith.subf %128, %135 : vector<10x64xf32>
    %137 = arith.mulf %136, %136 : vector<10x64xf32>
    %cst_46 = arith.constant dense<0.000000e+00> : vector<10xf32>
    %138 = vector.multi_reduction <add>, %137, %cst_46 [1] : vector<10x64xf32> to vector<10xf32>
    %139 = vector.shape_cast %138 : vector<10xf32> to vector<10x1xf32>
    %cst_47 = arith.constant 6.400000e+01 : f32
    %140 = vector.broadcast %cst_47 : f32 to vector<10x1xf32>
    %141 = arith.divf %139, %140 : vector<10x1xf32>
    %cst_48 = arith.constant 9.99999997E-7 : f32
    %142 = vector.broadcast %cst_48 : f32 to vector<10x1xf32>
    %143 = arith.addf %141, %142 : vector<10x1xf32>
    %144 = math.rsqrt %143 : vector<10x1xf32>
    %145 = vector.broadcast %144 : vector<10x1xf32> to vector<10x64xf32>
    %146 = arith.mulf %136, %145 : vector<10x64xf32>
    %147 = vector.broadcast %129 : vector<1x64xf32> to vector<10x64xf32>
    %148 = arith.mulf %146, %147 : vector<10x64xf32>
    %149 = vector.broadcast %130 : vector<1x64xf32> to vector<10x64xf32>
    %150 = arith.addf %148, %149 : vector<10x64xf32>
    %151 = arith.truncf %150 : vector<10x64xf32> to vector<10x64xbf16>
    %cst_49 = arith.constant dense<0.000000e+00> : vector<10x128xf32>
    %152 = tpu.matmul %151, %9, %cst_49 {dimension_numbers = #tpu.dot_dimension_numbers<[1], [0], [0], [1], [0, 0, 1, 1], [], []>} : vector<10x64xbf16>, vector<64x128xbf16>, vector<10x128xf32> -> vector<10x128xf32>
    %c26 = arith.constant 26 : index
    %c0_50 = arith.constant 0 : index
    %153 = vector.load %arg4[%c26, %c0_50] : memref<39x192xf32, #tpu.memory_space<vmem>>, vector<1x128xf32>
    %154 = vector.broadcast %153 : vector<1x128xf32> to vector<10x128xf32>
    %155 = arith.addf %152, %154 : vector<10x128xf32>
    %cst_51 = arith.constant 5.000000e-01 : f32
    %156 = vector.broadcast %cst_51 : f32 to vector<10x128xf32>
    %157 = arith.mulf %156, %155 : vector<10x128xf32>
    %cst_52 = arith.constant 4.471500e-02 : f32
    %158 = vector.broadcast %cst_52 : f32 to vector<10x128xf32>
    %159 = arith.mulf %158, %155 : vector<10x128xf32>
    %160 = arith.mulf %159, %155 : vector<10x128xf32>
    %161 = arith.mulf %160, %155 : vector<10x128xf32>
    %162 = arith.addf %155, %161 : vector<10x128xf32>
    %cst_53 = arith.constant 0.797884583 : f32
    %163 = vector.broadcast %cst_53 : f32 to vector<10x128xf32>
    %164 = arith.mulf %163, %162 : vector<10x128xf32>
    %165 = math.tanh %164 : vector<10x128xf32>
    %cst_54 = arith.constant 1.000000e+00 : f32
    %166 = vector.broadcast %cst_54 : f32 to vector<10x128xf32>
    %167 = arith.addf %166, %165 : vector<10x128xf32>
    %168 = arith.mulf %157, %167 : vector<10x128xf32>
    %169 = arith.truncf %168 : vector<10x128xf32> to vector<10x128xbf16>
    %cst_55 = arith.constant dense<0.000000e+00> : vector<10x64xf32>
    %170 = tpu.matmul %169, %10, %cst_55 {dimension_numbers = #tpu.dot_dimension_numbers<[1], [0], [0], [1], [0, 0, 1, 1], [], []>} : vector<10x128xbf16>, vector<128x64xbf16>, vector<10x64xf32> -> vector<10x64xf32>
    %171 = arith.addf %128, %170 : vector<10x64xf32>
    %c27 = arith.constant 27 : index
    %c0_56 = arith.constant 0 : index
    %172 = vector.load %arg4[%c27, %c0_56] : memref<39x192xf32, #tpu.memory_space<vmem>>, vector<1x64xf32>
    %173 = vector.broadcast %172 : vector<1x64xf32> to vector<10x64xf32>
    %174 = arith.addf %171, %173 : vector<10x64xf32>
    %c320 = arith.constant 320 : index
    %c0_57 = arith.constant 0 : index
    %175 = vector.load %arg3[%c320, %c0_57] : memref<704x192xbf16, #tpu.memory_space<vmem>>, vector<64x192xbf16>
    %c384 = arith.constant 384 : index
    %c0_58 = arith.constant 0 : index
    %176 = vector.load %arg3[%c384, %c0_58] : memref<704x192xbf16, #tpu.memory_space<vmem>>, vector<64x64xbf16>
    %c448 = arith.constant 448 : index
    %c0_59 = arith.constant 0 : index
    %177 = vector.load %arg3[%c448, %c0_59] : memref<704x192xbf16, #tpu.memory_space<vmem>>, vector<64x128xbf16>
    %c512 = arith.constant 512 : index
    %c0_60 = arith.constant 0 : index
    %178 = vector.load %arg3[%c512, %c0_60] : memref<704x192xbf16, #tpu.memory_space<vmem>>, vector<128x64xbf16>
    %c28 = arith.constant 28 : index
    %c0_61 = arith.constant 0 : index
    %179 = vector.load %arg4[%c28, %c0_61] : memref<39x192xf32, #tpu.memory_space<vmem>>, vector<1x64xf32>
    %c29 = arith.constant 29 : index
    %c0_62 = arith.constant 0 : index
    %180 = vector.load %arg4[%c29, %c0_62] : memref<39x192xf32, #tpu.memory_space<vmem>>, vector<1x64xf32>
    %cst_63 = arith.constant dense<0.000000e+00> : vector<10xf32>
    %181 = vector.multi_reduction <add>, %174, %cst_63 [1] : vector<10x64xf32> to vector<10xf32>
    %182 = vector.shape_cast %181 : vector<10xf32> to vector<10x1xf32>
    %cst_64 = arith.constant 6.400000e+01 : f32
    %183 = vector.broadcast %cst_64 : f32 to vector<10x1xf32>
    %184 = arith.divf %182, %183 : vector<10x1xf32>
    %185 = vector.broadcast %184 : vector<10x1xf32> to vector<10x64xf32>
    %186 = arith.subf %174, %185 : vector<10x64xf32>
    %187 = arith.mulf %186, %186 : vector<10x64xf32>
    %cst_65 = arith.constant dense<0.000000e+00> : vector<10xf32>
    %188 = vector.multi_reduction <add>, %187, %cst_65 [1] : vector<10x64xf32> to vector<10xf32>
    %189 = vector.shape_cast %188 : vector<10xf32> to vector<10x1xf32>
    %cst_66 = arith.constant 6.400000e+01 : f32
    %190 = vector.broadcast %cst_66 : f32 to vector<10x1xf32>
    %191 = arith.divf %189, %190 : vector<10x1xf32>
    %cst_67 = arith.constant 9.99999997E-7 : f32
    %192 = vector.broadcast %cst_67 : f32 to vector<10x1xf32>
    %193 = arith.addf %191, %192 : vector<10x1xf32>
    %194 = math.rsqrt %193 : vector<10x1xf32>
    %195 = vector.broadcast %194 : vector<10x1xf32> to vector<10x64xf32>
    %196 = arith.mulf %186, %195 : vector<10x64xf32>
    %197 = vector.broadcast %179 : vector<1x64xf32> to vector<10x64xf32>
    %198 = arith.mulf %196, %197 : vector<10x64xf32>
    %199 = vector.broadcast %180 : vector<1x64xf32> to vector<10x64xf32>
    %200 = arith.addf %198, %199 : vector<10x64xf32>
    %201 = arith.truncf %200 : vector<10x64xf32> to vector<10x64xbf16>
    %cst_68 = arith.constant dense<0.000000e+00> : vector<10x192xf32>
    %202 = tpu.matmul %201, %175, %cst_68 {dimension_numbers = #tpu.dot_dimension_numbers<[1], [0], [0], [1], [0, 0, 1, 1], [], []>} : vector<10x64xbf16>, vector<64x192xbf16>, vector<10x192xf32> -> vector<10x192xf32>
    %c30 = arith.constant 30 : index
    %c0_69 = arith.constant 0 : index
    %203 = vector.load %arg4[%c30, %c0_69] : memref<39x192xf32, #tpu.memory_space<vmem>>, vector<1x192xf32>
    %204 = vector.broadcast %203 : vector<1x192xf32> to vector<10x192xf32>
    %205 = arith.addf %202, %204 : vector<10x192xf32>
    %206 = vector.extract_strided_slice %205 {offsets = [0, 0], sizes = [10, 16], strides = [1, 1]} : vector<10x192xf32> to vector<10x16xf32>
    %207 = arith.truncf %206 : vector<10x16xf32> to vector<10x16xbf16>
    %208 = vector.extract_strided_slice %205 {offsets = [0, 64], sizes = [10, 16], strides = [1, 1]} : vector<10x192xf32> to vector<10x16xf32>
    %209 = arith.truncf %208 : vector<10x16xf32> to vector<10x16xbf16>
    %210 = vector.extract_strided_slice %205 {offsets = [0, 128], sizes = [10, 16], strides = [1, 1]} : vector<10x192xf32> to vector<10x16xf32>
    %211 = arith.truncf %210 : vector<10x16xf32> to vector<10x16xbf16>
    %cst_70 = arith.constant dense<0.000000e+00> : vector<10x10xf32>
    %212 = tpu.matmul %207, %209, %cst_70 {dimension_numbers = #tpu.dot_dimension_numbers<[1], [1], [0], [0], [0, 0, 1, 0], [], []>} : vector<10x16xbf16>, vector<10x16xbf16>, vector<10x10xf32> -> vector<10x10xf32>
    %cst_71 = arith.constant 2.500000e-01 : f32
    %213 = vector.broadcast %cst_71 : f32 to vector<10x10xf32>
    %214 = arith.mulf %212, %213 : vector<10x10xf32>
    %215 = arith.addf %214, %6 : vector<10x10xf32>
    %cst_72 = arith.constant dense<0xFF800000> : vector<10xf32>
    %216 = vector.multi_reduction <maximumf>, %215, %cst_72 [1] : vector<10x10xf32> to vector<10xf32>
    %217 = vector.shape_cast %216 : vector<10xf32> to vector<10x1xf32>
    %218 = vector.broadcast %217 : vector<10x1xf32> to vector<10x10xf32>
    %219 = arith.subf %215, %218 : vector<10x10xf32>
    %220 = math.exp %219 : vector<10x10xf32>
    %cst_73 = arith.constant dense<0.000000e+00> : vector<10xf32>
    %221 = vector.multi_reduction <add>, %220, %cst_73 [1] : vector<10x10xf32> to vector<10xf32>
    %222 = vector.shape_cast %221 : vector<10xf32> to vector<10x1xf32>
    %223 = vector.broadcast %222 : vector<10x1xf32> to vector<10x10xf32>
    %224 = arith.divf %220, %223 : vector<10x10xf32>
    %225 = arith.truncf %224 : vector<10x10xf32> to vector<10x10xbf16>
    %cst_74 = arith.constant dense<0.000000e+00> : vector<10x16xf32>
    %226 = tpu.matmul %225, %211, %cst_74 {dimension_numbers = #tpu.dot_dimension_numbers<[1], [0], [0], [1], [0, 0, 1, 1], [], []>} : vector<10x10xbf16>, vector<10x16xbf16>, vector<10x16xf32> -> vector<10x16xf32>
    %227 = vector.extract_strided_slice %205 {offsets = [0, 16], sizes = [10, 16], strides = [1, 1]} : vector<10x192xf32> to vector<10x16xf32>
    %228 = arith.truncf %227 : vector<10x16xf32> to vector<10x16xbf16>
    %229 = vector.extract_strided_slice %205 {offsets = [0, 80], sizes = [10, 16], strides = [1, 1]} : vector<10x192xf32> to vector<10x16xf32>
    %230 = arith.truncf %229 : vector<10x16xf32> to vector<10x16xbf16>
    %231 = vector.extract_strided_slice %205 {offsets = [0, 144], sizes = [10, 16], strides = [1, 1]} : vector<10x192xf32> to vector<10x16xf32>
    %232 = arith.truncf %231 : vector<10x16xf32> to vector<10x16xbf16>
    %cst_75 = arith.constant dense<0.000000e+00> : vector<10x10xf32>
    %233 = tpu.matmul %228, %230, %cst_75 {dimension_numbers = #tpu.dot_dimension_numbers<[1], [1], [0], [0], [0, 0, 1, 0], [], []>} : vector<10x16xbf16>, vector<10x16xbf16>, vector<10x10xf32> -> vector<10x10xf32>
    %cst_76 = arith.constant 2.500000e-01 : f32
    %234 = vector.broadcast %cst_76 : f32 to vector<10x10xf32>
    %235 = arith.mulf %233, %234 : vector<10x10xf32>
    %236 = arith.addf %235, %6 : vector<10x10xf32>
    %cst_77 = arith.constant dense<0xFF800000> : vector<10xf32>
    %237 = vector.multi_reduction <maximumf>, %236, %cst_77 [1] : vector<10x10xf32> to vector<10xf32>
    %238 = vector.shape_cast %237 : vector<10xf32> to vector<10x1xf32>
    %239 = vector.broadcast %238 : vector<10x1xf32> to vector<10x10xf32>
    %240 = arith.subf %236, %239 : vector<10x10xf32>
    %241 = math.exp %240 : vector<10x10xf32>
    %cst_78 = arith.constant dense<0.000000e+00> : vector<10xf32>
    %242 = vector.multi_reduction <add>, %241, %cst_78 [1] : vector<10x10xf32> to vector<10xf32>
    %243 = vector.shape_cast %242 : vector<10xf32> to vector<10x1xf32>
    %244 = vector.broadcast %243 : vector<10x1xf32> to vector<10x10xf32>
    %245 = arith.divf %241, %244 : vector<10x10xf32>
    %246 = arith.truncf %245 : vector<10x10xf32> to vector<10x10xbf16>
    %cst_79 = arith.constant dense<0.000000e+00> : vector<10x16xf32>
    %247 = tpu.matmul %246, %232, %cst_79 {dimension_numbers = #tpu.dot_dimension_numbers<[1], [0], [0], [1], [0, 0, 1, 1], [], []>} : vector<10x10xbf16>, vector<10x16xbf16>, vector<10x16xf32> -> vector<10x16xf32>
    %248 = vector.extract_strided_slice %205 {offsets = [0, 32], sizes = [10, 16], strides = [1, 1]} : vector<10x192xf32> to vector<10x16xf32>
    %249 = arith.truncf %248 : vector<10x16xf32> to vector<10x16xbf16>
    %250 = vector.extract_strided_slice %205 {offsets = [0, 96], sizes = [10, 16], strides = [1, 1]} : vector<10x192xf32> to vector<10x16xf32>
    %251 = arith.truncf %250 : vector<10x16xf32> to vector<10x16xbf16>
    %252 = vector.extract_strided_slice %205 {offsets = [0, 160], sizes = [10, 16], strides = [1, 1]} : vector<10x192xf32> to vector<10x16xf32>
    %253 = arith.truncf %252 : vector<10x16xf32> to vector<10x16xbf16>
    %cst_80 = arith.constant dense<0.000000e+00> : vector<10x10xf32>
    %254 = tpu.matmul %249, %251, %cst_80 {dimension_numbers = #tpu.dot_dimension_numbers<[1], [1], [0], [0], [0, 0, 1, 0], [], []>} : vector<10x16xbf16>, vector<10x16xbf16>, vector<10x10xf32> -> vector<10x10xf32>
    %cst_81 = arith.constant 2.500000e-01 : f32
    %255 = vector.broadcast %cst_81 : f32 to vector<10x10xf32>
    %256 = arith.mulf %254, %255 : vector<10x10xf32>
    %257 = arith.addf %256, %6 : vector<10x10xf32>
    %cst_82 = arith.constant dense<0xFF800000> : vector<10xf32>
    %258 = vector.multi_reduction <maximumf>, %257, %cst_82 [1] : vector<10x10xf32> to vector<10xf32>
    %259 = vector.shape_cast %258 : vector<10xf32> to vector<10x1xf32>
    %260 = vector.broadcast %259 : vector<10x1xf32> to vector<10x10xf32>
    %261 = arith.subf %257, %260 : vector<10x10xf32>
    %262 = math.exp %261 : vector<10x10xf32>
    %cst_83 = arith.constant dense<0.000000e+00> : vector<10xf32>
    %263 = vector.multi_reduction <add>, %262, %cst_83 [1] : vector<10x10xf32> to vector<10xf32>
    %264 = vector.shape_cast %263 : vector<10xf32> to vector<10x1xf32>
    %265 = vector.broadcast %264 : vector<10x1xf32> to vector<10x10xf32>
    %266 = arith.divf %262, %265 : vector<10x10xf32>
    %267 = arith.truncf %266 : vector<10x10xf32> to vector<10x10xbf16>
    %cst_84 = arith.constant dense<0.000000e+00> : vector<10x16xf32>
    %268 = tpu.matmul %267, %253, %cst_84 {dimension_numbers = #tpu.dot_dimension_numbers<[1], [0], [0], [1], [0, 0, 1, 1], [], []>} : vector<10x10xbf16>, vector<10x16xbf16>, vector<10x16xf32> -> vector<10x16xf32>
    %269 = vector.extract_strided_slice %205 {offsets = [0, 48], sizes = [10, 16], strides = [1, 1]} : vector<10x192xf32> to vector<10x16xf32>
    %270 = arith.truncf %269 : vector<10x16xf32> to vector<10x16xbf16>
    %271 = vector.extract_strided_slice %205 {offsets = [0, 112], sizes = [10, 16], strides = [1, 1]} : vector<10x192xf32> to vector<10x16xf32>
    %272 = arith.truncf %271 : vector<10x16xf32> to vector<10x16xbf16>
    %273 = vector.extract_strided_slice %205 {offsets = [0, 176], sizes = [10, 16], strides = [1, 1]} : vector<10x192xf32> to vector<10x16xf32>
    %274 = arith.truncf %273 : vector<10x16xf32> to vector<10x16xbf16>
    %cst_85 = arith.constant dense<0.000000e+00> : vector<10x10xf32>
    %275 = tpu.matmul %270, %272, %cst_85 {dimension_numbers = #tpu.dot_dimension_numbers<[1], [1], [0], [0], [0, 0, 1, 0], [], []>} : vector<10x16xbf16>, vector<10x16xbf16>, vector<10x10xf32> -> vector<10x10xf32>
    %cst_86 = arith.constant 2.500000e-01 : f32
    %276 = vector.broadcast %cst_86 : f32 to vector<10x10xf32>
    %277 = arith.mulf %275, %276 : vector<10x10xf32>
    %278 = arith.addf %277, %6 : vector<10x10xf32>
    %cst_87 = arith.constant dense<0xFF800000> : vector<10xf32>
    %279 = vector.multi_reduction <maximumf>, %278, %cst_87 [1] : vector<10x10xf32> to vector<10xf32>
    %280 = vector.shape_cast %279 : vector<10xf32> to vector<10x1xf32>
    %281 = vector.broadcast %280 : vector<10x1xf32> to vector<10x10xf32>
    %282 = arith.subf %278, %281 : vector<10x10xf32>
    %283 = math.exp %282 : vector<10x10xf32>
    %cst_88 = arith.constant dense<0.000000e+00> : vector<10xf32>
    %284 = vector.multi_reduction <add>, %283, %cst_88 [1] : vector<10x10xf32> to vector<10xf32>
    %285 = vector.shape_cast %284 : vector<10xf32> to vector<10x1xf32>
    %286 = vector.broadcast %285 : vector<10x1xf32> to vector<10x10xf32>
    %287 = arith.divf %283, %286 : vector<10x10xf32>
    %288 = arith.truncf %287 : vector<10x10xf32> to vector<10x10xbf16>
    %cst_89 = arith.constant dense<0.000000e+00> : vector<10x16xf32>
    %289 = tpu.matmul %288, %274, %cst_89 {dimension_numbers = #tpu.dot_dimension_numbers<[1], [0], [0], [1], [0, 0, 1, 1], [], []>} : vector<10x10xbf16>, vector<10x16xbf16>, vector<10x16xf32> -> vector<10x16xf32>
    %290 = tpu.concatenate %226, %247, %268, %289 in 1 : vector<10x16xf32>, vector<10x16xf32>, vector<10x16xf32>, vector<10x16xf32> -> vector<10x64xf32>
    %291 = arith.truncf %290 : vector<10x64xf32> to vector<10x64xbf16>
    %cst_90 = arith.constant dense<0.000000e+00> : vector<10x64xf32>
    %292 = tpu.matmul %291, %176, %cst_90 {dimension_numbers = #tpu.dot_dimension_numbers<[1], [0], [0], [1], [0, 0, 1, 1], [], []>} : vector<10x64xbf16>, vector<64x64xbf16>, vector<10x64xf32> -> vector<10x64xf32>
    %293 = arith.addf %174, %292 : vector<10x64xf32>
    %c31 = arith.constant 31 : index
    %c0_91 = arith.constant 0 : index
    %294 = vector.load %arg4[%c31, %c0_91] : memref<39x192xf32, #tpu.memory_space<vmem>>, vector<1x64xf32>
    %295 = vector.broadcast %294 : vector<1x64xf32> to vector<10x64xf32>
    %296 = arith.addf %293, %295 : vector<10x64xf32>
    %c32 = arith.constant 32 : index
    %c0_92 = arith.constant 0 : index
    %297 = vector.load %arg4[%c32, %c0_92] : memref<39x192xf32, #tpu.memory_space<vmem>>, vector<1x64xf32>
    %c33 = arith.constant 33 : index
    %c0_93 = arith.constant 0 : index
    %298 = vector.load %arg4[%c33, %c0_93] : memref<39x192xf32, #tpu.memory_space<vmem>>, vector<1x64xf32>
    %cst_94 = arith.constant dense<0.000000e+00> : vector<10xf32>
    %299 = vector.multi_reduction <add>, %296, %cst_94 [1] : vector<10x64xf32> to vector<10xf32>
    %300 = vector.shape_cast %299 : vector<10xf32> to vector<10x1xf32>
    %cst_95 = arith.constant 6.400000e+01 : f32
    %301 = vector.broadcast %cst_95 : f32 to vector<10x1xf32>
    %302 = arith.divf %300, %301 : vector<10x1xf32>
    %303 = vector.broadcast %302 : vector<10x1xf32> to vector<10x64xf32>
    %304 = arith.subf %296, %303 : vector<10x64xf32>
    %305 = arith.mulf %304, %304 : vector<10x64xf32>
    %cst_96 = arith.constant dense<0.000000e+00> : vector<10xf32>
    %306 = vector.multi_reduction <add>, %305, %cst_96 [1] : vector<10x64xf32> to vector<10xf32>
    %307 = vector.shape_cast %306 : vector<10xf32> to vector<10x1xf32>
    %cst_97 = arith.constant 6.400000e+01 : f32
    %308 = vector.broadcast %cst_97 : f32 to vector<10x1xf32>
    %309 = arith.divf %307, %308 : vector<10x1xf32>
    %cst_98 = arith.constant 9.99999997E-7 : f32
    %310 = vector.broadcast %cst_98 : f32 to vector<10x1xf32>
    %311 = arith.addf %309, %310 : vector<10x1xf32>
    %312 = math.rsqrt %311 : vector<10x1xf32>
    %313 = vector.broadcast %312 : vector<10x1xf32> to vector<10x64xf32>
    %314 = arith.mulf %304, %313 : vector<10x64xf32>
    %315 = vector.broadcast %297 : vector<1x64xf32> to vector<10x64xf32>
    %316 = arith.mulf %314, %315 : vector<10x64xf32>
    %317 = vector.broadcast %298 : vector<1x64xf32> to vector<10x64xf32>
    %318 = arith.addf %316, %317 : vector<10x64xf32>
    %319 = arith.truncf %318 : vector<10x64xf32> to vector<10x64xbf16>
    %cst_99 = arith.constant dense<0.000000e+00> : vector<10x128xf32>
    %320 = tpu.matmul %319, %177, %cst_99 {dimension_numbers = #tpu.dot_dimension_numbers<[1], [0], [0], [1], [0, 0, 1, 1], [], []>} : vector<10x64xbf16>, vector<64x128xbf16>, vector<10x128xf32> -> vector<10x128xf32>
    %c34 = arith.constant 34 : index
    %c0_100 = arith.constant 0 : index
    %321 = vector.load %arg4[%c34, %c0_100] : memref<39x192xf32, #tpu.memory_space<vmem>>, vector<1x128xf32>
    %322 = vector.broadcast %321 : vector<1x128xf32> to vector<10x128xf32>
    %323 = arith.addf %320, %322 : vector<10x128xf32>
    %cst_101 = arith.constant 5.000000e-01 : f32
    %324 = vector.broadcast %cst_101 : f32 to vector<10x128xf32>
    %325 = arith.mulf %324, %323 : vector<10x128xf32>
    %cst_102 = arith.constant 4.471500e-02 : f32
    %326 = vector.broadcast %cst_102 : f32 to vector<10x128xf32>
    %327 = arith.mulf %326, %323 : vector<10x128xf32>
    %328 = arith.mulf %327, %323 : vector<10x128xf32>
    %329 = arith.mulf %328, %323 : vector<10x128xf32>
    %330 = arith.addf %323, %329 : vector<10x128xf32>
    %cst_103 = arith.constant 0.797884583 : f32
    %331 = vector.broadcast %cst_103 : f32 to vector<10x128xf32>
    %332 = arith.mulf %331, %330 : vector<10x128xf32>
    %333 = math.tanh %332 : vector<10x128xf32>
    %cst_104 = arith.constant 1.000000e+00 : f32
    %334 = vector.broadcast %cst_104 : f32 to vector<10x128xf32>
    %335 = arith.addf %334, %333 : vector<10x128xf32>
    %336 = arith.mulf %325, %335 : vector<10x128xf32>
    %337 = arith.truncf %336 : vector<10x128xf32> to vector<10x128xbf16>
    %cst_105 = arith.constant dense<0.000000e+00> : vector<10x64xf32>
    %338 = tpu.matmul %337, %178, %cst_105 {dimension_numbers = #tpu.dot_dimension_numbers<[1], [0], [0], [1], [0, 0, 1, 1], [], []>} : vector<10x128xbf16>, vector<128x64xbf16>, vector<10x64xf32> -> vector<10x64xf32>
    %339 = arith.addf %296, %338 : vector<10x64xf32>
    %c35 = arith.constant 35 : index
    %c0_106 = arith.constant 0 : index
    %340 = vector.load %arg4[%c35, %c0_106] : memref<39x192xf32, #tpu.memory_space<vmem>>, vector<1x64xf32>
    %341 = vector.broadcast %340 : vector<1x64xf32> to vector<10x64xf32>
    %342 = arith.addf %339, %341 : vector<10x64xf32>
    %343 = vector.extract_strided_slice %342 {offsets = [0, 0], sizes = [1, 64], strides = [1, 1]} : vector<10x64xf32> to vector<1x64xf32>
    %344 = vector.extract_strided_slice %342 {offsets = [5, 0], sizes = [1, 64], strides = [1, 1]} : vector<10x64xf32> to vector<1x64xf32>
    %345 = tpu.concatenate %343, %344 in 0 : vector<1x64xf32>, vector<1x64xf32> -> vector<2x64xf32>
    %c36 = arith.constant 36 : index
    %c0_107 = arith.constant 0 : index
    %346 = vector.load %arg4[%c36, %c0_107] : memref<39x192xf32, #tpu.memory_space<vmem>>, vector<1x64xf32>
    %c37 = arith.constant 37 : index
    %c0_108 = arith.constant 0 : index
    %347 = vector.load %arg4[%c37, %c0_108] : memref<39x192xf32, #tpu.memory_space<vmem>>, vector<1x64xf32>
    %cst_109 = arith.constant dense<0.000000e+00> : vector<2xf32>
    %348 = vector.multi_reduction <add>, %345, %cst_109 [1] : vector<2x64xf32> to vector<2xf32>
    %349 = vector.shape_cast %348 : vector<2xf32> to vector<2x1xf32>
    %cst_110 = arith.constant 6.400000e+01 : f32
    %350 = vector.broadcast %cst_110 : f32 to vector<2x1xf32>
    %351 = arith.divf %349, %350 : vector<2x1xf32>
    %352 = vector.broadcast %351 : vector<2x1xf32> to vector<2x64xf32>
    %353 = arith.subf %345, %352 : vector<2x64xf32>
    %354 = arith.mulf %353, %353 : vector<2x64xf32>
    %cst_111 = arith.constant dense<0.000000e+00> : vector<2xf32>
    %355 = vector.multi_reduction <add>, %354, %cst_111 [1] : vector<2x64xf32> to vector<2xf32>
    %356 = vector.shape_cast %355 : vector<2xf32> to vector<2x1xf32>
    %cst_112 = arith.constant 6.400000e+01 : f32
    %357 = vector.broadcast %cst_112 : f32 to vector<2x1xf32>
    %358 = arith.divf %356, %357 : vector<2x1xf32>
    %cst_113 = arith.constant 9.99999997E-7 : f32
    %359 = vector.broadcast %cst_113 : f32 to vector<2x1xf32>
    %360 = arith.addf %358, %359 : vector<2x1xf32>
    %361 = math.rsqrt %360 : vector<2x1xf32>
    %362 = vector.broadcast %361 : vector<2x1xf32> to vector<2x64xf32>
    %363 = arith.mulf %353, %362 : vector<2x64xf32>
    %364 = vector.broadcast %346 : vector<1x64xf32> to vector<2x64xf32>
    %365 = arith.mulf %363, %364 : vector<2x64xf32>
    %366 = vector.broadcast %347 : vector<1x64xf32> to vector<2x64xf32>
    %367 = arith.addf %365, %366 : vector<2x64xf32>
    %368 = arith.truncf %367 : vector<2x64xf32> to vector<2x64xbf16>
    %c640 = arith.constant 640 : index
    %c0_114 = arith.constant 0 : index
    %369 = vector.load %arg3[%c640, %c0_114] : memref<704x192xbf16, #tpu.memory_space<vmem>>, vector<64x128xbf16>
    %cst_115 = arith.constant dense<0.000000e+00> : vector<2x128xf32>
    %370 = tpu.matmul %368, %369, %cst_115 {dimension_numbers = #tpu.dot_dimension_numbers<[1], [0], [0], [1], [0, 0, 1, 1], [], []>} : vector<2x64xbf16>, vector<64x128xbf16>, vector<2x128xf32> -> vector<2x128xf32>
    %c38 = arith.constant 38 : index
    %c0_116 = arith.constant 0 : index
    %371 = vector.load %arg4[%c38, %c0_116] : memref<39x192xf32, #tpu.memory_space<vmem>>, vector<1x128xf32>
    %372 = vector.broadcast %371 : vector<1x128xf32> to vector<2x128xf32>
    %373 = arith.addf %370, %372 : vector<2x128xf32>
    %c0_117 = arith.constant 0 : index
    %c0_118 = arith.constant 0 : index
    %374 = vector.load %arg5[%c0_117, %c0_118] : memref<2x128xf32, #tpu.memory_space<vmem>>, vector<2x128xf32>
    tpu.vector_store %arg5[%c0_117, %c0_118], %373 {strides = array<i32>} : memref<2x128xf32, #tpu.memory_space<vmem>>, vector<2x128xf32>,
    return
  }
  func.func @transform_0(%arg0: i32) -> (i32, i32) {
    %c0_i32 = arith.constant 0 : i32
    %c0_i32_0 = arith.constant 0 : i32
    %c0_i32_1 = arith.constant 0 : i32
    return %c0_i32, %c0_i32_0 : i32, i32
  }
  func.func @transform_1(%arg0: i32) -> (i32, i32) {
    %c0_i32 = arith.constant 0 : i32
    %c0_i32_0 = arith.constant 0 : i32
    %c0_i32_1 = arith.constant 0 : i32
    return %c0_i32, %c0_i32_0 : i32, i32
  }
  func.func @transform_2(%arg0: i32) -> (i32, i32) {
    %c0_i32 = arith.constant 0 : i32
    %c0_i32_0 = arith.constant 0 : i32
    %c0_i32_1 = arith.constant 0 : i32
    return %c0_i32, %c0_i32_0 : i32, i32
  }
  func.func @transform_3(%arg0: i32) -> (i32, i32) {
    %c0_i32 = arith.constant 0 : i32
    %c0_i32_0 = arith.constant 0 : i32
    %c0_i32_1 = arith.constant 0 : i32
    return %c0_i32, %c0_i32_0 : i32, i32
  }
  func.func @transform_4(%arg0: i32) -> (i32, i32) {
    %c0_i32 = arith.constant 0 : i32
    %c0_i32_0 = arith.constant 0 : i32
    %c0_i32_1 = arith.constant 0 : i32
    return %c0_i32, %c0_i32_0 : i32, i32
  }
}

</mosaic_0001>

<bundles_post_ra>
// kernel: vit_forward.1
= control target key start
LH: loop header
LB: loop body
LE: loop exit
PB: predicated region body
PF: predicated region fallthrough
CT: control target
= control target key end

     0   :  { %s4474_s0 = inlined_call_operand.vmem [shape: f32[10,1024], index: 0, kind: input, shape index: {}]   ;;  %s4475_s1 = inlined_call_operand.vmem [shape: bf16[1024,64], index: 1, kind: input, shape index: {}]   ;;  %s4476_s2 = inlined_call_operand.vmem [shape: bf16[704,192], index: 2, kind: input, shape index: {}]   ;;  %s4477_s3 = inlined_call_operand.vmem [shape: f32[39,192], index: 3, kind: input, shape index: {}]   ;;  %s4478_s4 = inlined_call_operand.hbm [shape: f32[2,128], index: 4, kind: output, shape index: {}]  }
   0x1   :  { %v3390_v0 = vld [vmem:[%s4475_s1 + $0x40] sm:$0xff]   ;;  %v3394_v4 = vld [vmem:[%s4475_s1 + $0x48] sm:$0xff]   ;;  %v3398_v8 = vld [vmem:[%s4475_s1 + $0x50] sm:$0xff]  }
   0x2   :  { %v3391_v1 = vld [vmem:[%s4475_s1 + $0xc0] sm:$0xff]   ;;  %2990 = vmatprep.subr.bf16.mxu0 %v3390_v0  ;;  %v3395_v5 = vld [vmem:[%s4475_s1 + $0xc8] sm:$0xff]   ;;  %v3399_v9 = vld [vmem:[%s4475_s1 + $0xd0] sm:$0xff]  }
   0x3   :  { %v3392_v2 = vld [vmem:[%s4475_s1] sm:$0xff]   ;;  %3012 = vmatprep.subr.bf16.mxu1 %v3391_v1  ;;  %v3396_v6 = vld [vmem:[%s4475_s1 + $0x8] sm:$0xff]   ;;  %v3400_v10 = vld [vmem:[%s4475_s1 + $0x10] sm:$0xff]  }
   0x4   :  { %v3393_v3 = vld [vmem:[%s4475_s1 + $0x80] sm:$0xff]   ;;  %2991 = vmatpush3.bf16.msra.mxu0 %v3392_v2  ;;  %v3397_v7 = vld [vmem:[%s4475_s1 + $0x88] sm:$0xff]   ;;  %v3401_v11 = vld [vmem:[%s4475_s1 + $0x90] sm:$0xff]  }
   0x5   :  { %3013 = vmatpush3.bf16.msra.mxu1 %v3393_v3  ;;  %2992 = vmatprep.subr.bf16.mxu0 %v3394_v4  ;;  %v3402_v12 = vld [vmem:[%s4475_s1 + $0x58] sm:$0xff]   ;;  %v3406_v16 = vld [vmem:[%s4475_s1 + $0x60] sm:$0xff]   ;;  %v3410_v20 = vld [vmem:[%s4475_s1 + $0x68] sm:$0xff]  }
   0x6   :  { %3014 = vmatprep.subr.bf16.mxu1 %v3395_v5  ;;  %v3403_v13 = vld [vmem:[%s4475_s1 + $0xd8] sm:$0xff]   ;;  %v3407_v17 = vld [vmem:[%s4475_s1 + $0xe0] sm:$0xff]   ;;  %v3411_v21 = vld [vmem:[%s4475_s1 + $0xe8] sm:$0xff]  }
   0x7   :  { %v3404_v14 = vld [vmem:[%s4475_s1 + $0x18] sm:$0xff]   ;;  %v3408_v18 = vld [vmem:[%s4475_s1 + $0x20] sm:$0xff]   ;;  %v3412_v22 = vld [vmem:[%s4475_s1 + $0x28] sm:$0xff]  }
   0x8   :  { %2993 = vmatpush3.bf16.msra.mxu0 %v3396_v6  ;;  %v3405_v15 = vld [vmem:[%s4475_s1 + $0x98] sm:$0xff]   ;;  %v3409_v19 = vld [vmem:[%s4475_s1 + $0xa0] sm:$0xff]   ;;  %v3413_v23 = vld [vmem:[%s4475_s1 + $0xa8] sm:$0xff]  }
   0x9   :  { %3015 = vmatpush3.bf16.msra.mxu1 %v3397_v7  ;;  %2994 = vmatprep.subr.bf16.mxu0 %v3398_v8  ;;  %v3414_v24 = vld [vmem:[%s4475_s1 + $0x70] sm:$0xff]   ;;  %v3418_v28 = vld [vmem:[%s4475_s1 + $0x78] sm:$0xff]   ;;  %v20_v32 = vld [vmem:[%s4474_s0 + $0x8] sm:$0xff] }
   0xa   :  { %3016 = vmatprep.subr.bf16.mxu1 %v3399_v9  ;;  %v3415_v25 = vld [vmem:[%s4475_s1 + $0xf0] sm:$0xff]   ;;  %v3419_v29 = vld [vmem:[%s4475_s1 + $0xf8] sm:$0xff]   ;;  %v28_v33 = vld [vmem:[%s4474_s0 + $0x48] sm:$0x3] }
   0xb   :  { %v3416_v26 = vld [vmem:[%s4475_s1 + $0x30] sm:$0xff]   ;;  %v3420_v30 = vld [vmem:[%s4475_s1 + $0x38] sm:$0xff]   ;;  %v36_v35 = vpack.c.bf16 %v28_v33, %v20_v32  ;;  %v19_v37 = vld [vmem:[%s4474_s0] sm:$0xff] }
   0xc   :  { %2995 = vmatpush3.bf16.msra.mxu0 %v3400_v10  ;;  %v3417_v27 = vld [vmem:[%s4475_s1 + $0xb0] sm:$0xff]   ;;  %v3421_v31 = vld [vmem:[%s4475_s1 + $0xb8] sm:$0xff]   ;;  %v27_v38 = vld [vmem:[%s4474_s0 + $0x40] sm:$0x3] }
   0xd   :  { %3017 = vmatpush3.bf16.msra.mxu1 %v3401_v11  ;;  %2996 = vmatprep.subr.bf16.mxu0 %v3402_v12  ;;  %v22_v34 = vld [vmem:[%s4474_s0 + $0x18] sm:$0xff]  ;;  %v35_v40 = vpack.c.bf16 %v27_v38, %v19_v37  ;;  %v21_v41 = vld [vmem:[%s4474_s0 + $0x10] sm:$0xff]  ;;  %v3422_v44 = vld [vmem:[%s4475_s1 + $0x140] sm:$0xff]  }
   0xe   :  { %3018 = vmatprep.subr.bf16.mxu1 %v3403_v13  ;;  %v30_v36 = vld [vmem:[%s4474_s0 + $0x58] sm:$0x3]  ;;  %v29_v42 = vld [vmem:[%s4474_s0 + $0x50] sm:$0x3]  ;;  %589 = vmatprep.mubr.bf16.mxu0 %v36_v35  ;;  %v3423_v45 = vld [vmem:[%s4475_s1 + $0x1c0] sm:$0xff]  }
   0xf   :  { %v38_v39 = vpack.c.bf16 %v30_v36, %v22_v34  ;;  %v37_v43 = vpack.c.bf16 %v29_v42, %v21_v41  ;;  %v3424_v46 = vld [vmem:[%s4475_s1 + $0x100] sm:$0xff]   ;;  %v3426_v48 = vld [vmem:[%s4475_s1 + $0x148] sm:$0xff]   ;;  %v3430_v52 = vld [vmem:[%s4475_s1 + $0x150] sm:$0xff]  }
  0x10   :  { %2997 = vmatpush3.bf16.msra.mxu0 %v3404_v14  ;;  %v3425_v47 = vld [vmem:[%s4475_s1 + $0x180] sm:$0xff]   ;;  %v3427_v49 = vld [vmem:[%s4475_s1 + $0x1c8] sm:$0xff]   ;;  %v3431_v53 = vld [vmem:[%s4475_s1 + $0x1d0] sm:$0xff]  }
  0x11   :  { %3019 = vmatpush3.bf16.msra.mxu1 %v3405_v15  ;;  %2998 = vmatprep.subr.bf16.mxu0 %v3406_v16  ;;  %v3428_v50 = vld [vmem:[%s4475_s1 + $0x108] sm:$0xff]   ;;  %v3432_v54 = vld [vmem:[%s4475_s1 + $0x110] sm:$0xff]   ;;  %v3434_v56 = vld [vmem:[%s4475_s1 + $0x158] sm:$0xff]  }
  0x12   :  { %3020 = vmatprep.subr.bf16.mxu1 %v3407_v17  ;;  %630 = vmatprep.mubr.bf16.mxu1 %v38_v39  ;;  %v3429_v51 = vld [vmem:[%s4475_s1 + $0x188] sm:$0xff]   ;;  %v3433_v55 = vld [vmem:[%s4475_s1 + $0x190] sm:$0xff]   ;;  %v3435_v57 = vld [vmem:[%s4475_s1 + $0x1d8] sm:$0xff]  }
  0x13   :  { %v3436_v58 = vld [vmem:[%s4475_s1 + $0x118] sm:$0xff]   ;;  %v3438_v60 = vld [vmem:[%s4475_s1 + $0x160] sm:$0xff]   ;;  %v3442_v0 = vld [vmem:[%s4475_s1 + $0x168] sm:$0xff]  }
  0x14   :  { %2999 = vmatpush3.bf16.msra.mxu0 %v3408_v18  ;;  %v3437_v59 = vld [vmem:[%s4475_s1 + $0x198] sm:$0xff]   ;;  %v3439_v61 = vld [vmem:[%s4475_s1 + $0x1e0] sm:$0xff]   ;;  %v3443_v1 = vld [vmem:[%s4475_s1 + $0x1e8] sm:$0xff]  }
  0x15   :  { %3021 = vmatpush3.bf16.msra.mxu1 %v3409_v19  ;;  %3000 = vmatprep.subr.bf16.mxu0 %v3410_v20  ;;  %v3440_v62 = vld [vmem:[%s4475_s1 + $0x120] sm:$0xff]   ;;  %v3444_v2 = vld [vmem:[%s4475_s1 + $0x128] sm:$0xff]   ;;  %v3446_v4 = vld [vmem:[%s4475_s1 + $0x170] sm:$0xff]  }
  0x16   :  { %3022 = vmatprep.subr.bf16.mxu1 %v3411_v21  ;;  %v3441_v63 = vld [vmem:[%s4475_s1 + $0x1a0] sm:$0xff]   ;;  %v3445_v3 = vld [vmem:[%s4475_s1 + $0x1a8] sm:$0xff]   ;;  %v3447_v5 = vld [vmem:[%s4475_s1 + $0x1f0] sm:$0xff]  }
  0x17   :  { %v3448_v6 = vld [vmem:[%s4475_s1 + $0x130] sm:$0xff]   ;;  %v3450_v8 = vld [vmem:[%s4475_s1 + $0x178] sm:$0xff]   ;;  %v24_v12 = vld [vmem:[%s4474_s0 + $0x28] sm:$0xff] }
  0x18   :  { %3001 = vmatpush3.bf16.msra.mxu0 %v3412_v22  ;;  %v3449_v7 = vld [vmem:[%s4475_s1 + $0x1b0] sm:$0xff]   ;;  %v3451_v9 = vld [vmem:[%s4475_s1 + $0x1f8] sm:$0xff]   ;;  %v32_v13 = vld [vmem:[%s4474_s0 + $0x68] sm:$0x3] }
  0x19   :  { %3023 = vmatpush3.bf16.msra.mxu1 %v3413_v23  ;;  %3002 = vmatprep.subr.bf16.mxu0 %v3414_v24  ;;  %v3452_v10 = vld [vmem:[%s4475_s1 + $0x138] sm:$0xff]   ;;  %v40_v16 = vpack.c.bf16 %v32_v13, %v24_v12  ;;  %v23_v18 = vld [vmem:[%s4474_s0 + $0x20] sm:$0xff]  ;;  %v25_v20 = vld [vmem:[%s4474_s0 + $0x30] sm:$0xff] }
  0x1a   :  { %3024 = vmatprep.subr.bf16.mxu1 %v3415_v25  ;;  %v3453_v11 = vld [vmem:[%s4475_s1 + $0x1b8] sm:$0xff]   ;;  %v31_v19 = vld [vmem:[%s4474_s0 + $0x60] sm:$0x3]  ;;  %v33_v22 = vld [vmem:[%s4474_s0 + $0x70] sm:$0x3] }
  0x1b   :  { %v26_v14 = vld [vmem:[%s4474_s0 + $0x38] sm:$0xff]  ;;  %v39_v21 = vpack.c.bf16 %v31_v19, %v23_v18  ;;  %v41_v23 = vpack.c.bf16 %v33_v22, %v25_v20 }
  0x1c   :  { %3003 = vmatpush3.bf16.msra.mxu0 %v3416_v26  ;;  %v34_v15 = vld [vmem:[%s4474_s0 + $0x78] sm:$0x3] }
  0x1d   :  { %3025 = vmatpush3.bf16.msra.mxu1 %v3417_v27  ;;  %3004 = vmatprep.subr.bf16.mxu0 %v3418_v28  ;;  %v42_v17 = vpack.c.bf16 %v34_v15, %v26_v14 }
  0x1e   :  { %3026 = vmatprep.subr.bf16.mxu1 %v3419_v29 }
  0x20   :  { %3005 = vmatpush3.bf16.msra.mxu0 %v3420_v30 }
  0x21   :  { %3027 = vmatpush3.bf16.msra.mxu1 %v3421_v31  ;;  %3034 = vmatprep.subr.bf16.mxu0 %v3422_v44 }
  0x22   :  { %3056 = vmatprep.subr.bf16.mxu1 %v3423_v45 }
  0x23   :  { %590 = vmatmul.mubr.bf16.vlgmr.msra.gmra.mrb[0].mxu0 %v35_v40 }
  0x24   :  { %631 = vmatmul.mubr.bf16.vlgmr.msra.gmra.mrb[0].mxu1 %v37_v43  ;;  %3035 = vmatpush3.bf16.msra.mxu0 %v3424_v46 }
  0x25   :  { %3057 = vmatpush3.bf16.msra.mxu1 %v3425_v47  ;;  %3036 = vmatprep.subr.bf16.mxu0 %v3426_v48 }
  0x26   :  { %3058 = vmatprep.subr.bf16.mxu1 %v3427_v49  ;;  %671 = vmatprep.mubr.bf16.mxu0 %v40_v16 }
  0x27   :  { %712 = vmatprep.mubr.bf16.mxu1 %v42_v17 }
  0x28   :  { %3037 = vmatpush3.bf16.msra.mxu0 %v3428_v50 }
  0x29   :  { %3059 = vmatpush3.bf16.msra.mxu1 %v3429_v51  ;;  %3038 = vmatprep.subr.bf16.mxu0 %v3430_v52 }
  0x2a   :  { %3060 = vmatprep.subr.bf16.mxu1 %v3431_v53 }
  0x2c   :  { %3039 = vmatpush3.bf16.msra.mxu0 %v3432_v54 }
  0x2d   :  { %3061 = vmatpush3.bf16.msra.mxu1 %v3433_v55  ;;  %3040 = vmatprep.subr.bf16.mxu0 %v3434_v56 }
  0x2e   :  { %3062 = vmatprep.subr.bf16.mxu1 %v3435_v57 }
  0x30   :  { %3041 = vmatpush3.bf16.msra.mxu0 %v3436_v58 }
  0x31   :  { %3063 = vmatpush3.bf16.msra.mxu1 %v3437_v59  ;;  %3042 = vmatprep.subr.bf16.mxu0 %v3438_v60 }
  0x32   :  { %3064 = vmatprep.subr.bf16.mxu1 %v3439_v61 }
  0x34   :  { %3043 = vmatpush3.bf16.msra.mxu0 %v3440_v62 }
  0x35   :  { %3065 = vmatpush3.bf16.msra.mxu1 %v3441_v63  ;;  %3044 = vmatprep.subr.bf16.mxu0 %v3442_v0 }
  0x36   :  { %3066 = vmatprep.subr.bf16.mxu1 %v3443_v1 }
  0x38   :  { %3045 = vmatpush3.bf16.msra.mxu0 %v3444_v2 }
  0x39   :  { %3067 = vmatpush3.bf16.msra.mxu1 %v3445_v3  ;;  %3046 = vmatprep.subr.bf16.mxu0 %v3446_v4 }
  0x3a   :  { %3068 = vmatprep.subr.bf16.mxu1 %v3447_v5 }
  0x3c   :  { %3047 = vmatpush3.bf16.msra.mxu0 %v3448_v6 }
  0x3d   :  { %3069 = vmatpush3.bf16.msra.mxu1 %v3449_v7  ;;  %3048 = vmatprep.subr.bf16.mxu0 %v3450_v8 }
  0x3e   :  { %3070 = vmatprep.subr.bf16.mxu1 %v3451_v9 }
  0x40   :  { %3049 = vmatpush3.bf16.msra.mxu0 %v3452_v10 }
  0x41   :  { %3071 = vmatpush3.bf16.msra.mxu1 %v3453_v11 }
  0x43   :  { %672 = vmatmul.mubr.bf16.vlgmr.msra.gmra.mrb[4].mxu0 %v39_v21 }
  0x44   :  { %713 = vmatmul.mubr.bf16.vlgmr.msra.gmra.mrb[4].mxu1 %v41_v23 }
  0x45   :  { %9 = vsyncpa [#allocation3], 0  ;;  %v171_v26 = vld [vmem:[%s4477_s3] sm:$0xff]  ;;  %v172_v33 = vld [vmem:[%s4477_s3 + $0x10] sm:$0x3]  ;;  %vm765_vm0 = vcmask 523264  }
  0x46   :  { %vm769_vm1 = vcmask 517120   ;;  %v3456_v6 = vld [vmem:[%s4476_s2 + $0x4] ss:$8 sps:$4 sm:$0xff]   ;;  %v3454_v7 = vld [vmem:[%s4476_s2] ss:$8 sps:$4 sm:$0xff]   ;;  %v3628_v14 = vmov 0  }
  0x47   :  { %855 = vmatprep.subr.bf16.mxu0 %v3456_v6  ;;  %v3459_v8 = vld [vmem:[%s4476_s2 + $0x14] ss:$8 sps:$4 sm:$0xff]   ;;  %v3457_v9 = vld [vmem:[%s4476_s2 + $0x10] ss:$8 sps:$4 sm:$0xff]   ;;  %v3462_v10 = vld [vmem:[%s4476_s2 + $0x24] ss:$8 sps:$4 sm:$0xff]   ;;  %887 = vmatprep.mubr.bf16.mxu0 %v3628_v14 }
  0x48   :  { %856 = vmatpush1.bf16.msra.mxu0 %v3454_v7  ;;  %v3460_v11 = vld [vmem:[%s4476_s2 + $0x20] ss:$8 sps:$4 sm:$0xff]   ;;  %v3463_v12 = vld [vmem:[%s4476_s2 + $0x30] ss:$8 sps:$4 sm:$0xff]   ;;  %v3465_v13 = vld [vmem:[%s4476_s2 + $0x34] ss:$8 sps:$4 sm:$0xff]  }
  0x49   :  { %857 = vmatprep.subr.bf16.mxu0 %v3459_v8  ;;  %v763_v23 = vld [vmem:[%s4477_s3 + $0x24] ss:$0 sm:$0xff]  ;;  %vm3630_vm2 = vmmov 0   ;;  %s3631_s16 = smov 64   ;;  %s3632_s17 = smov 112   ;;  %vm903_vm3 = vcmask 130048  }
  0x4a   :  { %s3633_s18 = smov 32   ;;  %s3634_s19 = smov 96   ;;  %vm991_vm4 = vcmask 1044480   ;;  %vm955_vm5 = vcmask 1045504   ;;  %vm963_vm6 = vcmask 80896   ;;  %vm967_vm7 = vcmask 74752  }
  0x4b   :  { %s3635_s20 = smov 80   ;;  %s3636_s24 = smov 48   ;;  %vm1444_vm8 = vcmask 261120   ;;  %vm1447_vm9 = vcmask 392192   ;;  %vm2738_vm10 = vcmask 1040384  }
  0x4c   :  { %858 = vmatpush1.bf16.msra.mxu0 %v3457_v9  ;;  %s3637_s25 = smov 16   ;;  %s3638_s26 = smov [#allocation2]  }
  0x4d   :  { %859 = vmatprep.subr.bf16.mxu0 %v3462_v10 }
  0x50   :  { %860 = vmatpush1.bf16.msra.mxu0 %v3460_v11 }
  0x51   :  { %861 = vmatprep.subr.bf16.mxu0 %v3465_v13 }
  0x54   :  { %862 = vmatpush1.bf16.msra.mxu0 %v3463_v12 }
  0xf6   :  { %v3006_v24 = vpop.f32.mrb[0].mxu0 }
  0xf7   :  { %v3028_v25 = vpop.f32.mrb[0].mxu1  ;;  %v3007_v27 = vpop.f32.mrb[1].mxu0 }
  0xf8   :  { %v3008_v28 = vadd.f32 %v3007_v27, %v3006_v24  ;;  %v3029_v29 = vpop.f32.mrb[1].mxu1  ;;  %v3009_v30 = vpop.f32.mrb[2].mxu0  ;;  %v764_v27 = vld [vmem:[%s4477_s3 + $0x25] ss:$0 sm:$0xff] }
  0xf9   :  { %v3030_v31 = vadd.f32 %v3029_v29, %v3028_v25  ;;  %v3031_v32 = vpop.f32.mrb[2].mxu1  ;;  %v3010_v34 = vpop.f32.mrb[3].mxu0 }
  0xfa   :  { %v592_v35 = vadd.f32 %v3008_v28, %v171_v26  ;;  %v3011_v36 = vadd.f32 %v3010_v34, %v3009_v30  ;;  %v3032_v37 = vpop.f32.mrb[3].mxu1 }
  0xfb   :  { %v3033_v38 = vadd.f32 %v3032_v37, %v3031_v32  ;;  %v802_v32 = vlaneseq }
  0xfc   :  { %v633_v39 = vadd.f32 %v3030_v31, %v592_v35  ;;  %v595_v40 = vadd.f32 %v3011_v36, %v172_v33  ;;  %v3629_v35 = vmov 0.0   ;;  %v2913_v36 = vld [vmem:[%s4477_s3 + $0x26] ss:$8 sm:$0x3] }
  0xfd   :  { %v3954_v33 = vshrl.u32 %v802_v32, 7  ;;  %3153 = vmatprep.subr.bf16.mxu1 %v3629_v35  ;;  %3177 = vmatprep.subr.bf16.mxu0 %v3629_v35 }
  0xfe   :  { %v636_v41 = vadd.f32 %v3033_v38, %v595_v40  ;;  %3155 = vmatprep.mubr.msk.bf16.mxu1 %vm3630_vm2, %v3629_v35 }
  0xff   :  { %v804_v34 = vsub.s32 0, %v3954_v33  ;;  %v808_v37 = vsub.s32 1, %v3954_v33 }
 0x101   :  { %v805_v38 = vrot.slane %v2913_v36, %v804_v34  ;;  %v809_v40 = vrot.slane %v2913_v36, %v808_v37 }
 0x116   :  { %v3050_v42 = vpop.f32.mrb[4].mxu0 }
 0x117   :  { %v3072_v43 = vpop.f32.mrb[4].mxu1  ;;  %v3051_v44 = vpop.f32.mrb[5].mxu0 }
 0x118   :  { %v3052_v45 = vadd.f32 %v3051_v44, %v3050_v42  ;;  %v3073_v46 = vpop.f32.mrb[5].mxu1  ;;  %v3053_v47 = vpop.f32.mrb[6].mxu0 }
 0x119   :  { %v3074_v48 = vadd.f32 %v3073_v46, %v3072_v43  ;;  %v3075_v49 = vpop.f32.mrb[6].mxu1  ;;  %v3054_v50 = vpop.f32.mrb[7].mxu0 }
 0x11a   :  { %v674_v51 = vadd.f32 %v3052_v45, %v633_v39  ;;  %v3055_v52 = vadd.f32 %v3054_v50, %v3053_v47  ;;  %v3076_v53 = vpop.f32.mrb[7].mxu1 }
 0x11b   :  { %v3077_v54 = vadd.f32 %v3076_v53, %v3075_v49 }
 0x11c   :  { %v3910_v55 = vadd.f32 %v3074_v48, %v674_v51  ;;  %v677_v56 = vadd.f32 %v3055_v52, %v636_v41 }
 0x11e   :  { %v3912_v57 = vadd.f32 %v3077_v54, %v677_v56  ;;  %v766_v58 = vsel %vm765_vm0, %v3910_v55, 0.0 }
 0x11f   :  { %767 = vadd.xlane.f32.xlu0 %v766_v58 }
 0x120   :  { %v770_v59 = vsel %vm769_vm1, %v3912_v57, 0.0 }
 0x123   :  { %771 = vadd.xlane.f32.xlu0 %v770_v59  ;;  %v721_v59 = vld [vmem:[%s4477_s3 + $0x10] sm:$0xfc] }
 0x1ac   :  { %v768_v60 = vpop.xlane.xlu0 %767 }
 0x1ad   :  { %v774_v61 = vmul.f32 0.015625, %v768_v60  ;;  %v722_v60 = vld [vmem:[%s4477_s3 + $0x20] sm:$0xf] }
 0x1af   :  { %v776_v62 = vsub.f32 %v3910_v55, %v774_v61  ;;  %v956_v61 = vrot.slane %v721_v59, 2 }
 0x1b0   :  { %v772_v63 = vpop.xlane.xlu0 %771 }
 0x1b1   :  { %v775_v0 = vmul.f32 0.015625, %v772_v63  ;;  %v778_v1 = vmul.f32 %v776_v62, %v776_v62 }
 0x1b3   :  { %v777_v2 = vsub.f32 %v3912_v57, %v775_v0  ;;  %v780_v3 = vsel %vm765_vm0, %v778_v1, 0.0 }
 0x1b4   :  { %781 = vadd.xlane.f32.xlu1 %v780_v3 }
 0x1b5   :  { %v779_v4 = vmul.f32 %v777_v2, %v777_v2 }
 0x1b7   :  { %v783_v5 = vsel %vm769_vm1, %v779_v4, 0.0 }
 0x1b8   :  { %784 = vadd.xlane.f32.xlu1 %v783_v5 }
 0x241   :  { %v782_v15 = vpop.xlane.xlu1 %781 }
 0x242   :  { %v786_v16 = vmul.f32 0.015625, %v782_v15 }
 0x244   :  { %v788_v17 = vadd.f32 1e-06, %v786_v16 }
 0x245   :  { %v785_v18 = vpop.xlane.xlu1 %784 }
 0x246   :  { %3514 = vrsqrt.f32 %v788_v17  ;;  %v787_v19 = vmul.f32 0.015625, %v785_v18 }
 0x248   :  { %v789_v20 = vadd.f32 1e-06, %v787_v19 }
 0x24a   :  { %3516 = vrsqrt.f32 %v789_v20 }
 0x250   :  { %v3515_v21 = vpop.eup %3514 }
 0x251   :  { %v792_v22 = vmul.f32 %v3515_v21, %v776_v62  ;;  %v4007_v62 = vrot.slane %v722_v60, 2 }
 0x253   :  { %v794_v25 = vmul.f32 %v792_v22, %v763_v23  ;;  %v4010_v0 = vsel %vm955_vm5, %v956_v61, %v4007_v62 }
 0x254   :  { %v3517_v24 = vpop.eup %3516 }
 0x255   :  { %v793_v26 = vmul.f32 %v3517_v24, %v777_v2  ;;  %v796_v29 = vadd.f32 %v794_v25, %v764_v27 }
 0x257   :  { %v795_v28 = vmul.f32 %v793_v26, %v763_v23 }
 0x259   :  { %v797_v30 = vadd.f32 %v795_v28, %v764_v27 }
 0x25b   :  { %v798_v31 = vpack.c.bf16 %v797_v30, %v796_v29 }
 0x25d   :  { %2922 = vmatmul.mubr.msk.bf16.vlgmr.msra.gmra.mrb[8].mxu0 %vm765_vm0, %v798_v31 }
 0x25e   :  { %3179 = vmatprep.mubr.msk.bf16.mxu0 %vm3630_vm2, %v3629_v35 }
 0x330   :  { %v889_v39 = vpop.f32.mrb[8].mxu0 }
 0x331   :  { %v891_v41 = vpop.f32.mrb[9].mxu0  ;;  %v890_v43 = vadd.f32 %v889_v39, %v805_v38 }
 0x332   :  { %v893_v42 = vpop.f32.mrb[10].mxu0  ;;  %v892_v46 = vadd.f32 %v891_v41, %v809_v40 }
 0x333   :  { %v894_v44 = vadd.f32 %v893_v42, %v805_v38  ;;  %v895_v45 = vpop.f32.mrb[11].mxu0 }
 0x334   :  { %v896_v47 = vadd.f32 %v895_v45, %v809_v40 }
 0x335   :  { %v3971_v48 = vpack.c.bf16 %v894_v44, %v890_v43 }
 0x336   :  { %v3973_v49 = vpack.c.bf16 %v896_v47, %v892_v46 }
 0x337   :  { %901 = vrot.lane.b32.xlu0 %v3971_v48, %s3631_s16 }
 0x338   :  { %v993_v56 = vsel %vm991_vm4, %v3973_v49, 0 }
 0x33b   :  { %1036 = vrot.lane.b32.xlu0 %v3971_v48, %s3632_s17 }
 0x33f   :  { %1166 = vrot.lane.b32.xlu0 %v3971_v48, %s3633_s18 }
 0x343   :  { %1164 = vrot.lane.b32.xlu0 %v3971_v48, %s3634_s19 }
 0x347   :  { %1291 = vrot.lane.b32.xlu0 %v3971_v48, %s3635_s20 }
 0x3a9   :  { %v902_v50 = vpop.permute.xlu0 %901 }
 0x3aa   :  { %v908_v51 = vsel %vm903_vm3, %v902_v50, 0 }
 0x3ab   :  { %3154 = vmatpush3.bf16.xpose.msra.mxu1 %v908_v51 }
 0x3ac   :  { %3159 = vmatprep.subr.bf16.mxu1 %v3629_v35 }
 0x3ad   :  { %v3987_v52 = vpop.permute.xlu0 %1036 }
 0x3b1   :  { %v1167_v53 = vpop.permute.xlu0 %1166 }
 0x3b2   :  { %v1172_v54 = vsel %vm903_vm3, %v1167_v53, 0  ;;  %3156 = vmatmul.mubr.msk.bf16.vlgmr.msra.gmra.mrb[8].mxu1 %vm903_vm3, %v3971_v48 }
 0x3b3   :  { %3160 = vmatpush3.bf16.msra.mxu1 %v993_v56  ;;  %3178 = vmatpush3.bf16.xpose.msra.mxu0 %v1172_v54 }
 0x3b4   :  { %3189 = vmatprep.subr.bf16.mxu0 %v3629_v35  ;;  %3161 = vmatprep.mubr.msk.bf16.mxu1 %vm3630_vm2, %v3629_v35 }
 0x3b5   :  { %3165 = vmatprep.subr.bf16.mxu1 %v3629_v35  ;;  %v1165_v58 = vpop.permute.xlu0 %1164 }
 0x3b9   :  { %v1292_v39 = vpop.permute.xlu0 %1291 }
 0x3ba   :  { %3180 = vmatmul.mubr.msk.bf16.vlgmr.msra.gmra.mrb[12].mxu0 %vm903_vm3, %v1165_v58 }
 0x3bb   :  { %3191 = vmatprep.mubr.msk.bf16.mxu0 %vm3630_vm2, %v3629_v35 }
 0x485   :  { %v944_v63 = vpop.f32.mrb[8].mxu1 }
 0x486   :  { %v951_v1 = vmul.f32 0.25, %v944_v63  ;;  %v3157_v2 = vpop.f32.mrb[9].mxu1 }
 0x487   :  { %v947_v3 = vpop.f32.mrb[10].mxu1 }
 0x488   :  { %v952_v4 = vmul.f32 0.25, %v947_v3  ;;  %v3158_v5 = vpop.f32.mrb[11].mxu1  ;;  %v961_v6 = vadd.f32 %v4010_v0, %v951_v1 }
 0x48a   :  { %v964_v7 = vsel %vm963_vm6, %v961_v6, -inf  ;;  %v962_v8 = vadd.f32 %v4007_v62, %v952_v4 }
 0x48b   :  { %965 = vmax.xlane.f32.xlu1 %v964_v7 }
 0x48c   :  { %v968_v11 = vsel %vm967_vm7, %v962_v8, -inf }
 0x48d   :  { %v1208_v9 = vpop.f32.mrb[12].mxu0 }
 0x48e   :  { %v3181_v10 = vpop.f32.mrb[13].mxu0  ;;  %v1215_v58 = vmul.f32 0.25, %v1208_v9 }
 0x48f   :  { %969 = vmax.xlane.f32.xlu1 %v968_v11  ;;  %v4016_v12 = vpop.f32.mrb[14].mxu0 }
 0x490   :  { %v3182_v13 = vpop.f32.mrb[15].mxu0  ;;  %v1216_v2 = vmul.f32 0.25, %v4016_v12  ;;  %v1217_v4 = vadd.f32 %v1215_v58, %v4010_v0 }
 0x492   :  { %v1219_v7 = vsel %vm963_vm6, %v1217_v4, -inf }
 0x518   :  { %v966_v15 = vpop.xlane.xlu1 %965 }
 0x519   :  { %v971_v16 = vsub.f32 %v961_v6, %v966_v15 }
 0x51b   :  { %v973_v17 = vmul.f32 1.442695, %v971_v16 }
 0x51c   :  { %v970_v18 = vpop.xlane.xlu1 %969 }
 0x51d   :  { %3518 = vpow2.f32 %v973_v17  ;;  %v972_v19 = vsub.f32 %v962_v8, %v970_v18  ;;  %v1218_v8 = vadd.f32 %v1216_v2, %v4007_v62 }
 0x51f   :  { %v975_v20 = vmul.f32 1.442695, %v972_v19  ;;  %v1222_v9 = vsel %vm967_vm7, %v1218_v8, -inf }
 0x521   :  { %3520 = vpow2.f32 %v975_v20 }
 0x527   :  { %v3519_v21 = vpop.eup %3518 }
 0x528   :  { %v977_v22 = vsel %vm963_vm6, %v3519_v21, 0.0 }
 0x529   :  { %978 = vadd.xlane.f32.xlu1 %v977_v22 }
 0x52b   :  { %v3521_v23 = vpop.eup %3520 }
 0x52c   :  { %v980_v24 = vsel %vm967_vm7, %v3521_v23, 0.0 }
 0x52d   :  { %981 = vadd.xlane.f32.xlu1 %v980_v24 }
 0x53e   :  { %1038 = vrot.lane.b32.xlu1 %v3971_v48, %s3636_s24 }
 0x542   :  { %1293 = vrot.lane.b32.xlu1 %v3971_v48, %s3637_s25 }
 0x5b6   :  { %v979_v25 = vpop.xlane.xlu1 %978 }
 0x5b7   :  { %3522 = vrcp.f32 %v979_v25 }
 0x5ba   :  { %v982_v26 = vpop.xlane.xlu1 %981 }
 0x5bb   :  { %3524 = vrcp.f32 %v982_v26 }
 0x5be   :  { %v1039_v27 = vpop.permute.xlu1 %1038 }
 0x5bf   :  { %v1044_v40 = vsel %vm903_vm3, %v1039_v27, 0 }
 0x5c1   :  { %v3523_v29 = vpop.eup %3522 }
 0x5c2   :  { %v1294_v28 = vpop.permute.xlu1 %1293  ;;  %v984_v32 = vmul.f32 %v3523_v29, %v3519_v21 }
 0x5c3   :  { %v1299_v30 = vsel %vm903_vm3, %v1294_v28, 0 }
 0x5c4   :  { %3190 = vmatpush3.bf16.xpose.msra.mxu0 %v1299_v30 }
 0x5c5   :  { %v3525_v31 = vpop.eup %3524  ;;  %3201 = vmatprep.subr.bf16.mxu0 %v3629_v35 }
 0x5c6   :  { %v986_v36 = vmul.f32 %v3525_v31, %v3521_v23 }
 0x5c8   :  { %v987_v38 = vpack.c.bf16 %v986_v36, %v984_v32 }
 0x5ca   :  { %3162 = vmatmul.mubr.msk.bf16.vlgmr.msra.gmra.mrb[12].mxu1 %vm963_vm6, %v987_v38 }
 0x5cb   :  { %3166 = vmatpush3.bf16.xpose.msra.mxu1 %v1044_v40  ;;  %3192 = vmatmul.mubr.msk.bf16.vlgmr.msra.gmra.mrb[16].mxu0 %vm903_vm3, %v1292_v39 }
 0x5cc   :  { %3167 = vmatprep.mubr.msk.bf16.mxu1 %vm3630_vm2, %v3629_v35  ;;  %3171 = vmatprep.subr.bf16.mxu1 %v3629_v35 }
 0x5cd   :  { %3209 = vmatprep.mubr.msk.bf16.mxu0 %vm3630_vm2, %v3629_v35 }
 0x5d2   :  { %3168 = vmatmul.mubr.msk.bf16.vlgmr.msra.gmra.mrb[16].mxu1 %vm903_vm3, %v3987_v52 }
 0x5d3   :  { %3173 = vmatprep.mubr.msk.bf16.mxu1 %vm3630_vm2, %v3629_v35 }
 0x69d   :  { %v4038_v41 = vpop.f32.mrb[12].mxu1 }
 0x69e   :  { %v3163_v42 = vpop.f32.mrb[13].mxu1  ;;  %v1335_v43 = vpop.f32.mrb[16].mxu0 }
 0x69f   :  { %v4040_v44 = vpop.f32.mrb[14].mxu1  ;;  %v3193_v45 = vpop.f32.mrb[17].mxu0  ;;  %v1342_v51 = vmul.f32 0.25, %v1335_v43 }
 0x6a0   :  { %v3164_v46 = vpop.f32.mrb[15].mxu1  ;;  %v1338_v47 = vpop.f32.mrb[18].mxu0 }
 0x6a1   :  { %v3194_v48 = vpop.f32.mrb[19].mxu0  ;;  %v1344_v1 = vadd.f32 %v1342_v51, %v4010_v0  ;;  %v1343_v6 = vmul.f32 0.25, %v1338_v47 }
 0x6a3   :  { %v1346_v5 = vsel %vm963_vm6, %v1344_v1, -inf  ;;  %v1345_v10 = vadd.f32 %v1343_v6, %v4007_v62 }
 0x6a5   :  { %v1080_v50 = vpop.f32.mrb[16].mxu1  ;;  %v1349_v11 = vsel %vm967_vm7, %v1345_v10, -inf }
 0x6a6   :  { %v1087_v53 = vmul.f32 0.25, %v1080_v50  ;;  %v3169_v54 = vpop.f32.mrb[17].mxu1 }
 0x6a7   :  { %v1083_v56 = vpop.f32.mrb[18].mxu1 }
 0x6a8   :  { %v1088_v52 = vmul.f32 0.25, %v1083_v56  ;;  %v3170_v59 = vpop.f32.mrb[19].mxu1  ;;  %v1089_v60 = vadd.f32 %v1087_v53, %v4010_v0 }
 0x6aa   :  { %v1091_v61 = vsel %vm963_vm6, %v1089_v60, -inf  ;;  %v1090_v63 = vadd.f32 %v1088_v52, %v4007_v62 }
 0x6ab   :  { %1092 = vmax.xlane.f32.xlu1 %v1091_v61 }
 0x6ac   :  { %v1094_v3 = vsel %vm967_vm7, %v1090_v63, -inf }
 0x6ad   :  { %1095 = vmax.xlane.f32.xlu0 %v1094_v3 }
 0x6af   :  { %1347 = vmax.xlane.f32.xlu1 %v1346_v5 }
 0x6b1   :  { %1220 = vmax.xlane.f32.xlu0 %v1219_v7 }
 0x6b5   :  { %1223 = vmax.xlane.f32.xlu0 %v1222_v9 }
 0x6b9   :  { %1350 = vmax.xlane.f32.xlu0 %v1349_v11 }
 0x738   :  { %v1093_v12 = vpop.xlane.xlu1 %1092 }
 0x739   :  { %v1097_v19 = vsub.f32 %v1089_v60, %v1093_v12 }
 0x73a   :  { %v1096_v13 = vpop.xlane.xlu0 %1095 }
 0x73b   :  { %v1098_v20 = vsub.f32 %v1090_v63, %v1096_v13  ;;  %v1099_v25 = vmul.f32 1.442695, %v1097_v19 }
 0x73c   :  { %v1348_v15 = vpop.xlane.xlu1 %1347 }
 0x73d   :  { %v1352_v16 = vsub.f32 %v1344_v1, %v1348_v15  ;;  %v1101_v26 = vmul.f32 1.442695, %v1098_v20  ;;  %v3467_v20 = vld [vmem:[%s4476_s2 + $0x50] ss:$8 sps:$4 sm:$0xff]  }
 0x73e   :  { %v1221_v17 = vpop.xlane.xlu0 %1220 }
 0x73f   :  { %v1225_v18 = vsub.f32 %v1217_v4, %v1221_v17  ;;  %v1354_v21 = vmul.f32 1.442695, %v1352_v16  ;;  %v3466_v17 = vld [vmem:[%s4476_s2 + $0x40] ss:$8 sps:$4 sm:$0xff]  }
 0x740   :  { %3202 = vmatpush3.bf16.msra.mxu0 %v3466_v17  ;;  %v3471_v17 = vld [vmem:[%s4476_s2 + $0x90] ss:$8 sps:$4 sm:$0xff]  }
 0x741   :  { %v1227_v22 = vmul.f32 1.442695, %v1225_v18  ;;  %3203 = vmatprep.subr.bf16.mxu0 %v3629_v35 }
 0x742   :  { %v1224_v23 = vpop.xlane.xlu0 %1223 }
 0x743   :  { %3526 = vpow2.f32 %v1227_v22  ;;  %v1226_v24 = vsub.f32 %v1218_v8, %v1224_v23 }
 0x744   :  { %3528 = vpow2.f32 %v1354_v21  ;;  %3204 = vmatpush3.bf16.msra.mxu0 %v3467_v20 }
 0x745   :  { %v1229_v27 = vmul.f32 1.442695, %v1226_v24  ;;  %v3468_v24 = vld [vmem:[%s4476_s2 + $0x60] ss:$8 sps:$4 sm:$0xff]   ;;  %3205 = vmatprep.subr.bf16.mxu0 %v3629_v35 }
 0x746   :  { %v1351_v28 = vpop.xlane.xlu0 %1350 }
 0x747   :  { %3530 = vpow2.f32 %v1229_v27  ;;  %v1353_v29 = vsub.f32 %v1345_v10, %v1351_v28  ;;  %v3469_v27 = vld [vmem:[%s4476_s2 + $0x70] ss:$8 sps:$4 sm:$0xff]  }
 0x748   :  { %3532 = vpow2.f32 %v1099_v25  ;;  %3206 = vmatpush3.bf16.msra.mxu0 %v3468_v24 }
 0x749   :  { %3534 = vpow2.f32 %v1101_v26  ;;  %v1356_v30 = vmul.f32 1.442695, %v1353_v29  ;;  %3207 = vmatprep.subr.bf16.mxu0 %v3629_v35 }
 0x74b   :  { %3536 = vpow2.f32 %v1356_v30 }
 0x74c   :  { %3208 = vmatpush3.bf16.msra.mxu0 %v3469_v27 }
 0x74d   :  { %v3527_v31 = vpop.eup %3526  ;;  %3225 = vmatprep.subr.bf16.mxu0 %v3629_v35 }
 0x74e   :  { %v1231_v32 = vsel %vm963_vm6, %v3527_v31, 0.0  ;;  %v3529_v36 = vpop.eup %3528 }
 0x74f   :  { %1232 = vadd.xlane.f32.xlu1 %v1231_v32  ;;  %v1358_v40 = vsel %vm963_vm6, %v3529_v36, 0.0 }
 0x751   :  { %v3531_v38 = vpop.eup %3530 }
 0x752   :  { %v3533_v39 = vpop.eup %3532  ;;  %v1234_v42 = vsel %vm967_vm7, %v3531_v38, 0.0 }
 0x753   :  { %v3535_v43 = vpop.eup %3534  ;;  %1359 = vadd.xlane.f32.xlu1 %v1358_v40  ;;  %1235 = vadd.xlane.f32.xlu0 %v1234_v42  ;;  %v1103_v45 = vsel %vm963_vm6, %v3533_v39, 0.0 }
 0x754   :  { %v1106_v46 = vsel %vm967_vm7, %v3535_v43, 0.0 }
 0x755   :  { %v3537_v47 = vpop.eup %3536 }
 0x756   :  { %v1361_v48 = vsel %vm967_vm7, %v3537_v47, 0.0 }
 0x757   :  { %1104 = vadd.xlane.f32.xlu1 %v1103_v45  ;;  %1107 = vadd.xlane.f32.xlu0 %v1106_v46 }
 0x75b   :  { %1362 = vadd.xlane.f32.xlu0 %v1361_v48 }
 0x768   :  { %1115 = vrot.lane.b32.xlu1 %v3973_v49, %s3632_s17 }
 0x76c   :  { %1369 = vrot.lane.b32.xlu1 %v3973_v49, %s3635_s20 }
 0x771   :  { %1242 = vrot.lane.b32.xlu0 %v3973_v49, %s3634_s19 }
 0x7dc   :  { %v1233_v50 = vpop.xlane.xlu1 %1232 }
 0x7e0   :  { %v1360_v51 = vpop.xlane.xlu1 %1359  ;;  %v1236_v53 = vpop.xlane.xlu0 %1235 }
 0x7e4   :  { %v1105_v54 = vpop.xlane.xlu1 %1104  ;;  %v1108_v56 = vpop.xlane.xlu0 %1107 }
 0x7e5   :  { %3538 = vrcp.f32 %v1105_v54 }
 0x7e6   :  { %3540 = vrcp.f32 %v1108_v56 }
 0x7e7   :  { %3542 = vrcp.f32 %v1236_v53 }
 0x7e8   :  { %v1116_v58 = vpop.permute.xlu1 %1115  ;;  %3544 = vrcp.f32 %v1233_v50  ;;  %v1363_v59 = vpop.xlane.xlu0 %1362 }
 0x7e9   :  { %v1121_v52 = vsel %vm991_vm4, %v1116_v58, 0  ;;  %3546 = vrcp.f32 %v1363_v59 }
 0x7ea   :  { %3172 = vmatpush3.bf16.msra.mxu1 %v1121_v52  ;;  %3548 = vrcp.f32 %v1360_v51 }
 0x7eb   :  { %3183 = vmatprep.subr.bf16.mxu1 %v3629_v35 }
 0x7ec   :  { %v1243_v1 = vpop.permute.xlu0 %1242  ;;  %v1370_v8 = vpop.permute.xlu1 %1369 }
 0x7ed   :  { %v1248_v4 = vsel %vm991_vm4, %v1243_v1, 0  ;;  %v1375_v11 = vsel %vm991_vm4, %v1370_v8, 0 }
 0x7ef   :  { %v3539_v60 = vpop.eup %3538 }
 0x7f0   :  { %v3541_v61 = vpop.eup %3540  ;;  %v1110_v63 = vmul.f32 %v3539_v60, %v3533_v39 }
 0x7f1   :  { %v1112_v49 = vmul.f32 %v3541_v61, %v3535_v43  ;;  %v3543_v3 = vpop.eup %3542 }
 0x7f2   :  { %v3545_v5 = vpop.eup %3544  ;;  %v1240_v6 = vmul.f32 %v3543_v3, %v3531_v38 }
 0x7f3   :  { %v1113_v2 = vpack.c.bf16 %v1112_v49, %v1110_v63  ;;  %v1238_v7 = vmul.f32 %v3545_v5, %v3527_v31  ;;  %v3547_v10 = vpop.eup %3546 }
 0x7f4   :  { %v3549_v12 = vpop.eup %3548  ;;  %v1367_v13 = vmul.f32 %v3547_v10, %v3537_v47 }
 0x7f5   :  { %3174 = vmatmul.mubr.msk.bf16.vlgmr.msra.gmra.mrb[20].mxu1 %vm963_vm6, %v1113_v2  ;;  %v1241_v9 = vpack.c.bf16 %v1240_v6, %v1238_v7  ;;  %v1365_v15 = vmul.f32 %v3549_v12, %v3529_v36 }
 0x7f6   :  { %3184 = vmatpush3.bf16.msra.mxu1 %v1248_v4  ;;  %3185 = vmatprep.mubr.msk.bf16.mxu1 %vm3630_vm2, %v3629_v35 }
 0x7f7   :  { %3195 = vmatprep.subr.bf16.mxu1 %v3629_v35  ;;  %v1368_v16 = vpack.c.bf16 %v1367_v13, %v1365_v15 }
 0x7fd   :  { %3186 = vmatmul.mubr.msk.bf16.vlgmr.msra.gmra.mrb[24].mxu1 %vm963_vm6, %v1241_v9 }
 0x7fe   :  { %3196 = vmatpush3.bf16.msra.mxu1 %v1375_v11  ;;  %3197 = vmatprep.mubr.msk.bf16.mxu1 %vm3630_vm2, %v3629_v35 }
 0x7ff   :  { %3213 = vmatprep.subr.bf16.mxu1 %v3629_v35 }
 0x805   :  { %3198 = vmatmul.mubr.msk.bf16.vlgmr.msra.gmra.mrb[28].mxu1 %vm963_vm6, %v1368_v16  ;;  %v3470_v16 = vld [vmem:[%s4476_s2 + $0x80] ss:$8 sps:$4 sm:$0xff]  }
 0x806   :  { %3221 = vmatprep.mubr.msk.bf16.mxu1 %vm3630_vm2, %v3629_v35  ;;  %3214 = vmatpush3.bf16.msra.mxu1 %v3470_v16  ;;  %v1736_v16 = vld [vmem:[%s4477_s3 + $0x33] ss:$0 sm:$0xff] }
 0x807   :  { %3215 = vmatprep.subr.bf16.mxu1 %v3629_v35 }
 0x80a   :  { %3216 = vmatpush3.bf16.msra.mxu1 %v3471_v17 }
 0x80b   :  { %3217 = vmatprep.subr.bf16.mxu1 %v3629_v35 }
 0x8c8   :  { %v1157_v18 = vpop.f32.mrb[20].mxu1 }
 0x8c9   :  { %v3175_v19 = vpop.f32.mrb[21].mxu1 }
 0x8ca   :  { %v1160_v21 = vpop.f32.mrb[22].mxu1  ;;  %v3473_v19 = vld [vmem:[%s4476_s2 + $0xb0] ss:$8 sps:$4 sm:$0xff]  }
 0x8cb   :  { %v3360_v22 = vpack.i.bf16 %v1160_v21, %v1157_v18  ;;  %v3176_v23 = vpop.f32.mrb[23].mxu1  ;;  %v3472_v18 = vld [vmem:[%s4476_s2 + $0xa0] ss:$8 sps:$4 sm:$0xff]  }
 0x8cc   :  { %3218 = vmatpush3.bf16.msra.mxu1 %v3472_v18 }
 0x8cd   :  { %3361 = vrot.lane.b32.xlu1 %v3360_v22, %s3637_s25  ;;  %3219 = vmatprep.subr.bf16.mxu1 %v3629_v35 }
 0x8d0   :  { %v1284_v25 = vpop.f32.mrb[24].mxu1  ;;  %3220 = vmatpush3.bf16.msra.mxu1 %v3473_v19 }
 0x8d1   :  { %v3187_v26 = vpop.f32.mrb[25].mxu1 }
 0x8d2   :  { %v1287_v28 = vpop.f32.mrb[26].mxu1 }
 0x8d3   :  { %v3365_v29 = vpack.i.bf16 %v1287_v28, %v1284_v25  ;;  %v3188_v30 = vpop.f32.mrb[27].mxu1  ;;  %v1524_v28 = vld [vmem:[%s4477_s3 + $0x30] ss:$0 sm:$0xff] }
 0x8d5   :  { %3366 = vrot.lane.b32.xlu1 %v3365_v29, %s3633_s18 }
 0x8d8   :  { %v1411_v31 = vpop.f32.mrb[28].mxu1 }
 0x8d9   :  { %v3199_v32 = vpop.f32.mrb[29].mxu1 }
 0x8da   :  { %v1414_v36 = vpop.f32.mrb[30].mxu1  ;;  %v1525_v32 = vld [vmem:[%s4477_s3 + $0x31] ss:$0 sm:$0xff] }
 0x8db   :  { %v3370_v38 = vpack.i.bf16 %v1414_v36, %v1411_v31  ;;  %v3200_v39 = vpop.f32.mrb[31].mxu1 }
 0x8dd   :  { %3371 = vrot.lane.b32.xlu0 %v3370_v38, %s3636_s24 }
 0x93f   :  { %v3362_v40 = vpop.permute.xlu1 %3361 }
 0x940   :  { %v3364_v43 = vunpack.i.h.bf16 %v3362_v40  ;;  %v3363_v45 = vunpack.i.l.bf16 %v3362_v40 }
 0x942   :  { %v1443_v50 = vsel %vm903_vm3, %v4040_v44, %v3364_v43  ;;  %v1442_v51 = vsel %vm903_vm3, %v4038_v41, %v3363_v45  ;;  %v1521_v41 = vld [vmem:[%s4477_s3 + $0x27] ss:$0 sm:$0xff]  ;;  %v3475_v43 = vld [vmem:[%s4476_s2 + $0xd0] ss:$8 sps:$4 sm:$0xff]   ;;  %v3476_v45 = vld [vmem:[%s4476_s2 + $0xe0] ss:$8 sps:$4 sm:$0xff]  }
 0x947   :  { %v3367_v42 = vpop.permute.xlu1 %3366 }
 0x948   :  { %v3369_v46 = vunpack.i.h.bf16 %v3367_v42  ;;  %v3368_v47 = vunpack.i.l.bf16 %v3367_v42  ;;  %v3474_v42 = vld [vmem:[%s4476_s2 + $0xc0] ss:$8 sps:$4 sm:$0xff]  }
 0x94a   :  { %v1446_v56 = vsel %vm1444_vm8, %v1443_v50, %v3369_v46  ;;  %v1445_v58 = vsel %vm1444_vm8, %v1442_v51, %v3368_v47  ;;  %v3478_v46 = vld [vmem:[%s4476_s2 + $0x100] ss:$8 sps:$4 sm:$0xff]   ;;  %v3479_v47 = vld [vmem:[%s4476_s2 + $0x110] ss:$8 sps:$4 sm:$0xff]  }
 0x94b   :  { %v3481_v50 = vld [vmem:[%s4476_s2 + $0x130] ss:$8 sps:$4 sm:$0xff]  }
 0x94c   :  { %v1557_v51 = vld [vmem:[%s4477_s3 + $0x32] ss:$0 sm:$0xff] }
 0x94f   :  { %v3372_v48 = vpop.permute.xlu0 %3371 }
 0x950   :  { %v3374_v53 = vunpack.i.h.bf16 %v3372_v48  ;;  %v3373_v54 = vunpack.i.l.bf16 %v3372_v48  ;;  %v3480_v48 = vld [vmem:[%s4476_s2 + $0x120] ss:$8 sps:$4 sm:$0xff]  }
 0x952   :  { %v1449_v52 = vsel %vm1447_vm9, %v1446_v56, %v3374_v53  ;;  %v1448_v59 = vsel %vm1447_vm9, %v1445_v58, %v3373_v54 }
 0x953   :  { %v1450_v60 = vpack.c.bf16 %v1449_v52, %v1448_v59 }
 0x955   :  { %3210 = vmatmul.mubr.msk.bf16.vlgmr.msra.gmra.mrb[20].mxu0 %vm765_vm0, %v1450_v60 }
 0x956   :  { %3241 = vmatprep.mubr.msk.bf16.mxu0 %vm3630_vm2, %v3629_v35  ;;  %3226 = vmatpush3.bf16.msra.mxu0 %v3474_v42  ;;  %v3485_v42 = vld [vmem:[%s4476_s2 + $0x150] ss:$8 sps:$4 sm:$0xff]  }
 0x957   :  { %3227 = vmatprep.subr.bf16.mxu0 %v3629_v35 }
 0x95a   :  { %3228 = vmatpush3.bf16.msra.mxu0 %v3475_v43  ;;  %v3490_v43 = vld [vmem:[%s4476_s2 + $0x164] ss:$8 sps:$4 sm:$0xff]  }
 0x95b   :  { %3229 = vmatprep.subr.bf16.mxu0 %v3629_v35 }
 0x95e   :  { %3230 = vmatpush3.bf16.msra.mxu0 %v3476_v45  ;;  %v3488_v45 = vld [vmem:[%s4476_s2 + $0x160] ss:$8 sps:$4 sm:$0xff]  }
 0x95f   :  { %3231 = vmatprep.subr.bf16.mxu0 %v3629_v35 }
 0xa28   :  { %v1512_v44 = vpop.f32.mrb[20].mxu0 }
 0xa29   :  { %v1519_v61 = vadd.f32 %v1512_v44, %v3910_v55  ;;  %v3211_v63 = vpop.f32.mrb[21].mxu0 }
 0xa2a   :  { %v1515_v49 = vpop.f32.mrb[22].mxu0 }
 0xa2b   :  { %v4116_v1 = vadd.f32 %v1521_v41, %v1519_v61  ;;  %v1520_v2 = vadd.f32 %v1515_v49, %v3912_v57  ;;  %v3212_v3 = vpop.f32.mrb[23].mxu0 }
 0xa2d   :  { %v4119_v4 = vadd.f32 %v1521_v41, %v1520_v2  ;;  %v1526_v5 = vsel %vm765_vm0, %v4116_v1, 0.0 }
 0xa2e   :  { %1527 = vadd.xlane.f32.xlu1 %v1526_v5 }
 0xa2f   :  { %v1529_v6 = vsel %vm769_vm1, %v4119_v4, 0.0 }
 0xa30   :  { %1530 = vadd.xlane.f32.xlu0 %v1529_v6 }
 0xabb   :  { %v1528_v7 = vpop.xlane.xlu1 %1527 }
 0xabc   :  { %v1532_v8 = vmul.f32 0.015625, %v1528_v7 }
 0xabd   :  { %v1531_v55 = vpop.xlane.xlu0 %1530 }
 0xabe   :  { %v1534_v9 = vsub.f32 %v4116_v1, %v1532_v8  ;;  %v1533_v10 = vmul.f32 0.015625, %v1531_v55 }
 0xac0   :  { %v1535_v11 = vsub.f32 %v4119_v4, %v1533_v10  ;;  %v1536_v57 = vmul.f32 %v1534_v9, %v1534_v9 }
 0xac2   :  { %v1538_v12 = vsel %vm765_vm0, %v1536_v57, 0.0  ;;  %v1537_v13 = vmul.f32 %v1535_v11, %v1535_v11 }
 0xac3   :  { %1539 = vadd.xlane.f32.xlu0 %v1538_v12 }
 0xac4   :  { %v1541_v15 = vsel %vm769_vm1, %v1537_v13, 0.0 }
 0xac7   :  { %1542 = vadd.xlane.f32.xlu0 %v1541_v15 }
 0xb50   :  { %v1540_v20 = vpop.xlane.xlu0 %1539 }
 0xb51   :  { %v1544_v21 = vmul.f32 0.015625, %v1540_v20 }
 0xb53   :  { %v1546_v22 = vadd.f32 1e-06, %v1544_v21 }
 0xb54   :  { %v1543_v23 = vpop.xlane.xlu0 %1542 }
 0xb55   :  { %3550 = vrsqrt.f32 %v1546_v22  ;;  %v1545_v24 = vmul.f32 0.015625, %v1543_v23 }
 0xb57   :  { %v1547_v25 = vadd.f32 1e-06, %v1545_v24 }
 0xb59   :  { %3552 = vrsqrt.f32 %v1547_v25 }
 0xb5f   :  { %v3551_v26 = vpop.eup %3550 }
 0xb60   :  { %v1550_v27 = vmul.f32 %v3551_v26, %v1534_v9 }
 0xb62   :  { %v1552_v30 = vmul.f32 %v1550_v27, %v1524_v28 }
 0xb63   :  { %v3553_v29 = vpop.eup %3552 }
 0xb64   :  { %v1551_v31 = vmul.f32 %v3553_v29, %v1535_v11  ;;  %v1554_v38 = vadd.f32 %v1552_v30, %v1525_v32 }
 0xb66   :  { %v1553_v36 = vmul.f32 %v1551_v31, %v1524_v28 }
 0xb68   :  { %v1555_v39 = vadd.f32 %v1553_v36, %v1525_v32 }
 0xb6a   :  { %v1556_v40 = vpack.c.bf16 %v1555_v39, %v1554_v38  ;;  %v3484_v38 = vld [vmem:[%s4476_s2 + $0x144] ss:$8 sps:$4 sm:$0xff]   ;;  %v3482_v39 = vld [vmem:[%s4476_s2 + $0x140] ss:$8 sps:$4 sm:$0xff]  }
 0xb6b   :  { %1868 = vmatprep.subr.bf16.mxu1 %v3484_v38 }
 0xb6c   :  { %3222 = vmatmul.mubr.msk.bf16.vlgmr.msra.gmra.mrb[32].mxu1 %vm765_vm0, %v1556_v40  ;;  %v3487_v40 = vld [vmem:[%s4476_s2 + $0x154] ss:$8 sps:$4 sm:$0xff]  }
 0xb6d   :  { %1900 = vmatprep.mubr.bf16.mxu1 %v3628_v14  ;;  %v3477_v14 = vld [vmem:[%s4476_s2 + $0xf0] ss:$8 sps:$4 sm:$0xff]   ;;  %1869 = vmatpush1.bf16.msra.mxu1 %v3482_v39 }
 0xb6e   :  { %3232 = vmatpush3.bf16.msra.mxu0 %v3477_v14  ;;  %1870 = vmatprep.subr.bf16.mxu1 %v3487_v40  ;;  %v3491_v14 = vld [vmem:[%s4476_s2 + $0x170] ss:$8 sps:$4 sm:$0xff]  }
 0xb6f   :  { %3233 = vmatprep.subr.bf16.mxu0 %v3629_v35 }
 0xb71   :  { %1871 = vmatpush1.bf16.msra.mxu1 %v3485_v42 }
 0xb72   :  { %3234 = vmatpush3.bf16.msra.mxu0 %v3478_v46  ;;  %1872 = vmatprep.subr.bf16.mxu1 %v3490_v43  ;;  %v3493_v46 = vld [vmem:[%s4476_s2 + $0x174] ss:$8 sps:$4 sm:$0xff]  }
 0xb73   :  { %3235 = vmatprep.subr.bf16.mxu0 %v3629_v35 }
 0xb75   :  { %1873 = vmatpush1.bf16.msra.mxu1 %v3488_v45 }
 0xb76   :  { %3236 = vmatpush3.bf16.msra.mxu0 %v3479_v47  ;;  %1874 = vmatprep.subr.bf16.mxu1 %v3493_v46 }
 0xb77   :  { %3237 = vmatprep.subr.bf16.mxu0 %v3629_v35 }
 0xb79   :  { %1875 = vmatpush1.bf16.msra.mxu1 %v3491_v14 }
 0xb7a   :  { %3238 = vmatpush3.bf16.msra.mxu0 %v3480_v48  ;;  %3245 = vmatprep.subr.bf16.mxu1 %v3629_v35 }
 0xb7b   :  { %3239 = vmatprep.subr.bf16.mxu0 %v3629_v35 }
 0xb7e   :  { %3240 = vmatpush3.bf16.msra.mxu0 %v3481_v50 }
 0xb7f   :  { %3257 = vmatprep.subr.bf16.mxu0 %v3629_v35 }
 0xc3f   :  { %v1619_v53 = vpop.f32.mrb[32].mxu1 }
 0xc40   :  { %v1620_v54 = vadd.f32 %v1619_v53, %v1557_v51  ;;  %v3223_v56 = vpop.f32.mrb[33].mxu1 }
 0xc41   :  { %v1622_v58 = vpop.f32.mrb[34].mxu1 }
 0xc42   :  { %v1628_v52 = vmul.f32 0.044715, %v1620_v54  ;;  %v1623_v59 = vadd.f32 %v1622_v58, %v1557_v51  ;;  %v3224_v60 = vpop.f32.mrb[35].mxu1  ;;  %v1626_v9 = vmul.f32 0.5, %v1620_v54  ;;  %v1779_v58 = vld [vmem:[%s4477_s3 + $0x34] ss:$0 sm:$0xff] }
 0xc44   :  { %v1630_v44 = vmul.f32 %v1628_v52, %v1620_v54  ;;  %v1629_v41 = vmul.f32 0.044715, %v1623_v59  ;;  %v1627_v10 = vmul.f32 0.5, %v1623_v59 }
 0xc46   :  { %v1632_v61 = vmul.f32 %v1630_v44, %v1620_v54  ;;  %v1631_v63 = vmul.f32 %v1629_v41, %v1623_v59  ;;  %v1780_v41 = vld [vmem:[%s4477_s3 + $0x35] ss:$0 sm:$0xff] }
 0xc48   :  { %v1634_v49 = vadd.f32 %v1632_v61, %v1620_v54  ;;  %v1633_v2 = vmul.f32 %v1631_v63, %v1623_v59 }
 0xc4a   :  { %v1636_v3 = vmul.f32 0.7978846, %v1634_v49  ;;  %v1635_v5 = vadd.f32 %v1633_v2, %v1623_v59 }
 0xc4c   :  { %3554 = vtanh.f32 %v1636_v3  ;;  %v1637_v6 = vmul.f32 0.7978846, %v1635_v5  ;;  %v2949_v3 = vld [vmem:[%s4477_s3 + $0x36] ss:$8 sm:$0x3] }
 0xc4d   :  { %v1818_v5 = vrot.slane %v2949_v3, %v804_v34 }
 0xc4e   :  { %3556 = vtanh.f32 %v1637_v6 }
 0xc56   :  { %v3555_v7 = vpop.eup %3554 }
 0xc57   :  { %v1640_v8 = vadd.f32 1.0, %v3555_v7  ;;  %v1822_v7 = vrot.slane %v2949_v3, %v808_v37 }
 0xc58   :  { %v3557_v55 = vpop.eup %3556 }
 0xc59   :  { %v1641_v11 = vadd.f32 1.0, %v3557_v55  ;;  %v1642_v57 = vmul.f32 %v1640_v8, %v1626_v9 }
 0xc5b   :  { %v1643_v12 = vmul.f32 %v1641_v11, %v1627_v10 }
 0xc5d   :  { %v1644_v13 = vpack.c.bf16 %v1643_v12, %v1642_v57 }
 0xc5f   :  { %3242 = vmatmul.mubr.bf16.vlgmr.msra.gmra.mrb[24].mxu0 %v1644_v13 }
 0xc60   :  { %3259 = vmatprep.mubr.msk.bf16.mxu0 %vm3630_vm2, %v3629_v35 }
 0xd32   :  { %v1727_v15 = vpop.f32.mrb[24].mxu0 }
 0xd33   :  { %v1734_v17 = vadd.f32 %v1727_v15, %v4116_v1  ;;  %v3243_v18 = vpop.f32.mrb[25].mxu0 }
 0xd34   :  { %v1730_v19 = vpop.f32.mrb[26].mxu0 }
 0xd35   :  { %v4193_v20 = vadd.f32 %v1736_v16, %v1734_v17  ;;  %v1735_v21 = vadd.f32 %v1730_v19, %v4119_v4  ;;  %v3244_v22 = vpop.f32.mrb[27].mxu0 }
 0xd37   :  { %v4196_v23 = vadd.f32 %v1736_v16, %v1735_v21  ;;  %v1781_v24 = vsel %vm765_vm0, %v4193_v20, 0.0 }
 0xd38   :  { %1782 = vadd.xlane.f32.xlu1 %v1781_v24 }
 0xd39   :  { %v1784_v25 = vsel %vm769_vm1, %v4196_v23, 0.0 }
 0xd3a   :  { %1785 = vadd.xlane.f32.xlu0 %v1784_v25 }
 0xdc5   :  { %v1783_v26 = vpop.xlane.xlu1 %1782 }
 0xdc6   :  { %v1787_v27 = vmul.f32 0.015625, %v1783_v26 }
 0xdc7   :  { %v1786_v1 = vpop.xlane.xlu0 %1785 }
 0xdc8   :  { %v1789_v28 = vsub.f32 %v4193_v20, %v1787_v27  ;;  %v1788_v29 = vmul.f32 0.015625, %v1786_v1 }
 0xdca   :  { %v1790_v30 = vsub.f32 %v4196_v23, %v1788_v29  ;;  %v1791_v4 = vmul.f32 %v1789_v28, %v1789_v28 }
 0xdcc   :  { %v1793_v31 = vsel %vm765_vm0, %v1791_v4, 0.0  ;;  %v1792_v32 = vmul.f32 %v1790_v30, %v1790_v30 }
 0xdcd   :  { %1794 = vadd.xlane.f32.xlu1 %v1793_v31 }
 0xdce   :  { %v1796_v36 = vsel %vm769_vm1, %v1792_v32, 0.0 }
 0xdcf   :  { %1797 = vadd.xlane.f32.xlu0 %v1796_v36 }
 0xe5a   :  { %v1795_v47 = vpop.xlane.xlu1 %1794 }
 0xe5b   :  { %v1799_v48 = vmul.f32 0.015625, %v1795_v47 }
 0xe5c   :  { %v1798_v50 = vpop.xlane.xlu0 %1797 }
 0xe5d   :  { %v1801_v51 = vadd.f32 1e-06, %v1799_v48  ;;  %v1800_v53 = vmul.f32 0.015625, %v1798_v50 }
 0xe5f   :  { %3558 = vrsqrt.f32 %v1801_v51  ;;  %v1802_v54 = vadd.f32 1e-06, %v1800_v53 }
 0xe61   :  { %3560 = vrsqrt.f32 %v1802_v54 }
 0xe69   :  { %v3559_v56 = vpop.eup %3558 }
 0xe6a   :  { %v1805_v52 = vmul.f32 %v3559_v56, %v1789_v28 }
 0xe6b   :  { %v3561_v59 = vpop.eup %3560 }
 0xe6c   :  { %v1807_v60 = vmul.f32 %v1805_v52, %v1779_v58  ;;  %v1806_v44 = vmul.f32 %v3561_v59, %v1790_v30 }
 0xe6e   :  { %v1808_v61 = vmul.f32 %v1806_v44, %v1779_v58  ;;  %v1809_v63 = vadd.f32 %v1807_v60, %v1780_v41 }
 0xe70   :  { %v1810_v49 = vadd.f32 %v1808_v61, %v1780_v41 }
 0xe72   :  { %v1811_v2 = vpack.c.bf16 %v1810_v49, %v1809_v63 }
 0xe74   :  { %2958 = vmatmul.mubr.msk.bf16.vlgmr.msra.gmra.mrb[36].mxu1 %vm765_vm0, %v1811_v2 }
 0xe75   :  { %3247 = vmatprep.mubr.msk.bf16.mxu1 %vm3630_vm2, %v3629_v35 }
 0xf47   :  { %v1902_v6 = vpop.f32.mrb[36].mxu1 }
 0xf48   :  { %v1904_v8 = vpop.f32.mrb[37].mxu1  ;;  %v1903_v9 = vadd.f32 %v1902_v6, %v1818_v5 }
 0xf49   :  { %v1906_v55 = vpop.f32.mrb[38].mxu1  ;;  %v1905_v57 = vadd.f32 %v1904_v8, %v1822_v7 }
 0xf4a   :  { %v1907_v10 = vadd.f32 %v1906_v55, %v1818_v5  ;;  %v1908_v11 = vpop.f32.mrb[39].mxu1 }
 0xf4b   :  { %v1909_v12 = vadd.f32 %v1908_v11, %v1822_v7 }
 0xf4c   :  { %v1911_v13 = vpack.c.bf16 %v1907_v10, %v1903_v9 }
 0xf4d   :  { %v4247_v15 = vpack.c.bf16 %v1909_v12, %v1905_v57 }
 0xf4e   :  { %2039 = vrot.lane.b32.xlu0 %v1911_v13, %s3636_s24  ;;  %1914 = vrot.lane.b32.xlu1 %v1911_v13, %s3631_s16  ;;  %s2841_s16 = sshll.u32 %s3638_s26, 4  ;;  %s2842_s16 = int_to_ptr.vmem [resolvable:$true] %s2841_s16 }
 0xf4f   :  { %v1994_v21 = vsel %vm991_vm4, %v4247_v15, 0  ;;  %p3609_p1 = scmp.lt.s32.totalorder %s2842_s16, %s2842_s16 }
 0xf52   :  { %2294 = vrot.lane.b32.xlu0 %v1911_v13, %s3637_s25  ;;  %2037 = vrot.lane.b32.xlu1 %v1911_v13, %s3632_s17 }
 0xf56   :  { %2167 = vrot.lane.b32.xlu1 %v1911_v13, %s3633_s18 }
 0xf5a   :  { %2165 = vrot.lane.b32.xlu1 %v1911_v13, %s3634_s19 }
 0xf5e   :  { %2292 = vrot.lane.b32.xlu1 %v1911_v13, %s3635_s20 }
 0xfc0   :  { %v2040_v33 = vpop.permute.xlu0 %2039  ;;  %v1915_v34 = vpop.permute.xlu1 %1914 }
 0xfc1   :  { %v2045_v37 = vsel %vm903_vm3, %v2040_v33, 0  ;;  %v1920_v16 = vsel %vm903_vm3, %v1915_v34, 0 }
 0xfc2   :  { %3246 = vmatpush3.bf16.xpose.msra.mxu1 %v1920_v16  ;;  %3258 = vmatpush3.bf16.xpose.msra.mxu0 %v2045_v37 }
 0xfc3   :  { %3251 = vmatprep.subr.bf16.mxu1 %v3629_v35  ;;  %3269 = vmatprep.subr.bf16.mxu0 %v3629_v35 }
 0xfc4   :  { %v2038_v17 = vpop.permute.xlu1 %2037  ;;  %v2295_v22 = vpop.permute.xlu0 %2294 }
 0xfc5   :  { %v2300_v25 = vsel %vm903_vm3, %v2295_v22, 0 }
 0xfc8   :  { %v2168_v18 = vpop.permute.xlu1 %2167 }
 0xfc9   :  { %v2173_v19 = vsel %vm903_vm3, %v2168_v18, 0  ;;  %3248 = vmatmul.mubr.msk.bf16.vlgmr.msra.gmra.mrb[40].mxu1 %vm903_vm3, %v1911_v13  ;;  %3260 = vmatmul.mubr.msk.bf16.vlgmr.msra.gmra.mrb[28].mxu0 %vm903_vm3, %v2038_v17 }
 0xfca   :  { %3252 = vmatpush3.bf16.msra.mxu1 %v1994_v21  ;;  %3270 = vmatpush3.bf16.xpose.msra.mxu0 %v2173_v19 }
 0xfcb   :  { %3271 = vmatprep.mubr.msk.bf16.mxu0 %vm3630_vm2, %v3629_v35  ;;  %3281 = vmatprep.subr.bf16.mxu0 %v3629_v35 }
 0xfcc   :  { %3253 = vmatprep.mubr.msk.bf16.mxu1 %vm3630_vm2, %v3629_v35  ;;  %3263 = vmatprep.subr.bf16.mxu1 %v3629_v35  ;;  %v2166_v24 = vpop.permute.xlu1 %2165 }
 0xfd0   :  { %v2293_v26 = vpop.permute.xlu1 %2292 }
 0xfd1   :  { %3272 = vmatmul.mubr.msk.bf16.vlgmr.msra.gmra.mrb[32].mxu0 %vm903_vm3, %v2166_v24 }
 0xfd2   :  { %3282 = vmatpush3.bf16.xpose.msra.mxu0 %v2300_v25  ;;  %3283 = vmatprep.mubr.msk.bf16.mxu0 %vm3630_vm2, %v3629_v35 }
 0xfd3   :  { %3293 = vmatprep.subr.bf16.mxu0 %v3629_v35 }
 0xfd9   :  { %3284 = vmatmul.mubr.msk.bf16.vlgmr.msra.gmra.mrb[36].mxu0 %vm903_vm3, %v2293_v26 }
 0xfda   :  { %3301 = vmatprep.mubr.msk.bf16.mxu0 %vm3630_vm2, %v3629_v35 }
0x109c   :  { %v1956_v27 = vpop.f32.mrb[40].mxu1  ;;  %v2081_v1 = vpop.f32.mrb[28].mxu0 }
0x109d   :  { %v1963_v28 = vmul.f32 0.25, %v1956_v27  ;;  %v2088_v29 = vmul.f32 0.25, %v2081_v1  ;;  %v3249_v30 = vpop.f32.mrb[41].mxu1  ;;  %v3261_v4 = vpop.f32.mrb[29].mxu0 }
0x109e   :  { %v1959_v31 = vpop.f32.mrb[42].mxu1  ;;  %v2084_v32 = vpop.f32.mrb[30].mxu0 }
0x109f   :  { %v1964_v36 = vmul.f32 0.25, %v1959_v31  ;;  %v3250_v38 = vpop.f32.mrb[43].mxu1  ;;  %v3262_v39 = vpop.f32.mrb[31].mxu0  ;;  %v1965_v40 = vadd.f32 %v1963_v28, %v4010_v0  ;;  %v2089_v42 = vmul.f32 0.25, %v2084_v32  ;;  %v2090_v14 = vadd.f32 %v2088_v29, %v4010_v0 }
0x10a1   :  { %v1967_v43 = vsel %vm963_vm6, %v1965_v40, -inf  ;;  %v1966_v45 = vadd.f32 %v1964_v36, %v4007_v62  ;;  %v2092_v51 = vsel %vm963_vm6, %v2090_v14, -inf  ;;  %v2091_v53 = vadd.f32 %v2089_v42, %v4007_v62 }
0x10a2   :  { %1968 = vmax.xlane.f32.xlu0 %v1967_v43 }
0x10a3   :  { %v1970_v46 = vsel %vm967_vm7, %v1966_v45, -inf  ;;  %v2095_v52 = vsel %vm967_vm7, %v2091_v53, -inf }
0x10a4   :  { %1971 = vmax.xlane.f32.xlu1 %v1970_v46  ;;  %v2209_v47 = vpop.f32.mrb[32].mxu0 }
0x10a5   :  { %v2216_v48 = vmul.f32 0.25, %v2209_v47  ;;  %v3273_v50 = vpop.f32.mrb[33].mxu0 }
0x10a6   :  { %2093 = vmax.xlane.f32.xlu0 %v2092_v51  ;;  %v2212_v54 = vpop.f32.mrb[34].mxu0 }
0x10a7   :  { %v2217_v56 = vmul.f32 0.25, %v2212_v54  ;;  %v3274_v58 = vpop.f32.mrb[35].mxu0  ;;  %v2218_v60 = vadd.f32 %v2216_v48, %v4010_v0 }
0x10a9   :  { %v2219_v59 = vadd.f32 %v2217_v56, %v4007_v62  ;;  %v2220_v49 = vsel %vm963_vm6, %v2218_v60, -inf }
0x10aa   :  { %2096 = vmax.xlane.f32.xlu0 %v2095_v52 }
0x10ab   :  { %v2223_v44 = vsel %vm967_vm7, %v2219_v59, -inf }
0x10ac   :  { %2224 = vmax.xlane.f32.xlu1 %v2223_v44  ;;  %v2336_v41 = vpop.f32.mrb[36].mxu0 }
0x10ad   :  { %v2343_v61 = vmul.f32 0.25, %v2336_v41  ;;  %v3285_v63 = vpop.f32.mrb[37].mxu0 }
0x10ae   :  { %2221 = vmax.xlane.f32.xlu0 %v2220_v49  ;;  %v2339_v2 = vpop.f32.mrb[38].mxu0 }
0x10af   :  { %v2344_v3 = vmul.f32 0.25, %v2339_v2  ;;  %v3286_v5 = vpop.f32.mrb[39].mxu0  ;;  %v2345_v6 = vadd.f32 %v2343_v61, %v4010_v0 }
0x10b1   :  { %v2347_v7 = vsel %vm963_vm6, %v2345_v6, -inf  ;;  %v2346_v8 = vadd.f32 %v2344_v3, %v4007_v62 }
0x10b2   :  { %2348 = vmax.xlane.f32.xlu0 %v2347_v7 }
0x10b3   :  { %v2350_v55 = vsel %vm967_vm7, %v2346_v8, -inf }
0x10b4   :  { %2351 = vmax.xlane.f32.xlu1 %v2350_v55 }
0x112f   :  { %v1969_v9 = vpop.xlane.xlu0 %1968 }
0x1130   :  { %v1973_v10 = vsub.f32 %v1965_v40, %v1969_v9 }
0x1131   :  { %v1972_v11 = vpop.xlane.xlu1 %1971 }
0x1132   :  { %v1975_v57 = vmul.f32 1.442695, %v1973_v10  ;;  %v1974_v12 = vsub.f32 %v1966_v45, %v1972_v11 }
0x1133   :  { %v2094_v13 = vpop.xlane.xlu0 %2093 }
0x1134   :  { %3562 = vpow2.f32 %v1975_v57  ;;  %v1977_v33 = vmul.f32 1.442695, %v1974_v12  ;;  %v2098_v34 = vsub.f32 %v2090_v14, %v2094_v13 }
0x1136   :  { %3564 = vpow2.f32 %v1977_v33  ;;  %v2100_v37 = vmul.f32 1.442695, %v2098_v34 }
0x1137   :  { %v2097_v0 = vpop.xlane.xlu0 %2096 }
0x1138   :  { %3566 = vpow2.f32 %v2100_v37  ;;  %v2099_v16 = vsub.f32 %v2091_v53, %v2097_v0 }
0x1139   :  { %v2225_v17 = vpop.xlane.xlu1 %2224 }
0x113a   :  { %v2102_v62 = vmul.f32 1.442695, %v2099_v16  ;;  %v2227_v18 = vsub.f32 %v2219_v59, %v2225_v17 }
0x113b   :  { %v2222_v19 = vpop.xlane.xlu0 %2221 }
0x113c   :  { %3568 = vpow2.f32 %v2102_v62  ;;  %v2230_v21 = vmul.f32 1.442695, %v2227_v18  ;;  %v2226_v22 = vsub.f32 %v2218_v60, %v2222_v19 }
0x113e   :  { %v3563_v24 = vpop.eup %3562  ;;  %3570 = vpow2.f32 %v2230_v21  ;;  %v2228_v25 = vmul.f32 1.442695, %v2226_v22 }
0x113f   :  { %v2349_v26 = vpop.xlane.xlu0 %2348  ;;  %v1979_v27 = vsel %vm963_vm6, %v3563_v24, 0.0 }
0x1140   :  { %v3565_v1 = vpop.eup %3564  ;;  %3572 = vpow2.f32 %v2228_v25  ;;  %v2353_v28 = vsub.f32 %v2345_v6, %v2349_v26  ;;  %1980 = vadd.xlane.f32.xlu0 %v1979_v27  ;;  %v3494_v27 = vld [vmem:[%s4476_s2 + $0x180] ss:$8 sps:$4 sm:$0xff]  }
0x1141   :  { %v1982_v29 = vsel %vm967_vm7, %v3565_v1, 0.0  ;;  %v2352_v14 = vpop.xlane.xlu1 %2351  ;;  %3294 = vmatpush3.bf16.msra.mxu0 %v3494_v27 }
0x1142   :  { %v3567_v30 = vpop.eup %3566  ;;  %v2355_v4 = vmul.f32 1.442695, %v2353_v28  ;;  %1983 = vadd.xlane.f32.xlu1 %v1982_v29  ;;  %v2354_v46 = vsub.f32 %v2346_v8, %v2352_v14  ;;  %v3495_v29 = vld [vmem:[%s4476_s2 + $0x190] ss:$8 sps:$4 sm:$0xff]   ;;  %3295 = vmatprep.subr.bf16.mxu0 %v3629_v35 }
0x1143   :  { %v2104_v31 = vsel %vm963_vm6, %v3567_v30, 0.0 }
0x1144   :  { %3574 = vpow2.f32 %v2355_v4  ;;  %2105 = vadd.xlane.f32.xlu0 %v2104_v31  ;;  %v2357_v47 = vmul.f32 1.442695, %v2354_v46  ;;  %v3496_v4 = vld [vmem:[%s4476_s2 + $0x1a0] ss:$8 sps:$4 sm:$0xff]  }
0x1145   :  { %3296 = vmatpush3.bf16.msra.mxu0 %v3495_v29 }
0x1146   :  { %v3569_v32 = vpop.eup %3568  ;;  %3576 = vpow2.f32 %v2357_v47  ;;  %3297 = vmatprep.subr.bf16.mxu0 %v3629_v35 }
0x1147   :  { %v2107_v36 = vsel %vm967_vm7, %v3569_v32, 0.0 }
0x1148   :  { %v3571_v38 = vpop.eup %3570  ;;  %2108 = vadd.xlane.f32.xlu1 %v2107_v36 }
0x1149   :  { %v2235_v42 = vsel %vm967_vm7, %v3571_v38, 0.0  ;;  %3298 = vmatpush3.bf16.msra.mxu0 %v3496_v4 }
0x114a   :  { %v3573_v39 = vpop.eup %3572  ;;  %3299 = vmatprep.subr.bf16.mxu0 %v3629_v35 }
0x114b   :  { %v2232_v40 = vsel %vm963_vm6, %v3573_v39, 0.0 }
0x114c   :  { %2233 = vadd.xlane.f32.xlu0 %v2232_v40  ;;  %2236 = vadd.xlane.f32.xlu1 %v2235_v42 }
0x114e   :  { %v4301_v43 = vpop.eup %3574 }
0x114f   :  { %v2359_v45 = vsel %vm963_vm6, %v4301_v43, 0.0 }
0x1150   :  { %2360 = vadd.xlane.f32.xlu0 %v2359_v45  ;;  %v3577_v48 = vpop.eup %3576 }
0x1151   :  { %v2362_v50 = vsel %vm967_vm7, %v3577_v48, 0.0 }
0x115d   :  { %2243 = vrot.lane.b32.xlu1 %v4247_v15, %s3634_s19 }
0x1166   :  { %2116 = vrot.lane.b32.xlu0 %v4247_v15, %s3632_s17  ;;  %s3604_s17 = scalar_lea.vmem %s2842_s16, 32 }
0x1167   :  { %p3605_p0 = scmp.ne.s32.totalorder %s2842_s16, %s3604_s17  ;;  %p3610_p2 = scmp.lt.s32.totalorder %s3604_s17, %s3604_s17 }
0x1169   :  { %p3611_p3 = por %p3610_p2, %p3609_p1 }
0x116b   :  { %p3612_p4 = pnand %p3611_p3, %p3605_p0 }
0x1181   :  { %2363 = vadd.xlane.f32.xlu1 %v2362_v50 }
0x1192   :  { %2370 = vrot.lane.b32.xlu1 %v4247_v15, %s3635_s20 }
0x11cd   :  { %v1981_v51 = vpop.xlane.xlu0 %1980 }
0x11ce   :  { %3578 = vrcp.f32 %v1981_v51 }
0x11cf   :  { %v1984_v53 = vpop.xlane.xlu1 %1983 }
0x11d0   :  { %3580 = vrcp.f32 %v1984_v53 }
0x11d1   :  { %v2106_v54 = vpop.xlane.xlu0 %2105 }
0x11d2   :  { %3582 = vrcp.f32 %v2106_v54 }
0x11d5   :  { %v2109_v56 = vpop.xlane.xlu1 %2108 }
0x11d6   :  { %3584 = vrcp.f32 %v2109_v56 }
0x11d8   :  { %v3579_v58 = vpop.eup %3578 }
0x11d9   :  { %v2234_v52 = vpop.xlane.xlu0 %2233  ;;  %v2237_v59 = vpop.xlane.xlu1 %2236  ;;  %v1986_v44 = vmul.f32 %v3579_v58, %v3563_v24 }
0x11da   :  { %v3581_v60 = vpop.eup %3580  ;;  %3586 = vrcp.f32 %v2234_v52 }
0x11db   :  { %v1988_v41 = vmul.f32 %v3581_v60, %v3565_v1  ;;  %3588 = vrcp.f32 %v2237_v59 }
0x11dc   :  { %v3583_v49 = vpop.eup %3582 }
0x11dd   :  { %v2361_v61 = vpop.xlane.xlu0 %2360  ;;  %v1989_v63 = vpack.c.bf16 %v1988_v41, %v1986_v44  ;;  %v2111_v6 = vmul.f32 %v3583_v49, %v3567_v30  ;;  %v2244_v7 = vpop.permute.xlu1 %2243 }
0x11de   :  { %v2249_v10 = vsel %vm991_vm4, %v2244_v7, 0  ;;  %3590 = vrcp.f32 %v2361_v61 }
0x11df   :  { %3254 = vmatmul.mubr.msk.bf16.vlgmr.msra.gmra.mrb[44].mxu1 %vm963_vm6, %v1989_v63 }
0x11e0   :  { %v3585_v15 = vpop.eup %3584  ;;  %3265 = vmatprep.mubr.msk.bf16.mxu1 %vm3630_vm2, %v3629_v35 }
0x11e1   :  { %v2113_v2 = vmul.f32 %v3585_v15, %v3569_v32  ;;  %v2117_v3 = vpop.permute.xlu0 %2116  ;;  %v2520_v15 = vld [vmem:[%s4477_s3 + $0x37] ss:$0 sm:$0xff] }
0x11e2   :  { %v2122_v5 = vsel %vm991_vm4, %v2117_v3, 0 }
0x11e3   :  { %3264 = vmatpush3.bf16.msra.mxu1 %v2122_v5  ;;  %v2114_v55 = vpack.c.bf16 %v2113_v2, %v2111_v6 }
0x11e4   :  { %3275 = vmatprep.subr.bf16.mxu1 %v3629_v35  ;;  %v3587_v8 = vpop.eup %3586 }
0x11e5   :  { %v3589_v9 = vpop.eup %3588  ;;  %v2239_v11 = vmul.f32 %v3587_v8, %v3573_v39  ;;  %v3497_v39 = vld [vmem:[%s4476_s2 + $0x1b0] ss:$8 sps:$4 sm:$0xff]  }
0x11e6   :  { %v2241_v57 = vmul.f32 %v3589_v9, %v3571_v38  ;;  %3300 = vmatpush3.bf16.msra.mxu0 %v3497_v39 }
0x11e7   :  { %3266 = vmatmul.mubr.msk.bf16.vlgmr.msra.gmra.mrb[48].mxu1 %vm963_vm6, %v2114_v55  ;;  %3317 = vmatprep.subr.bf16.mxu0 %v3629_v35 }
0x11e8   :  { %3276 = vmatpush3.bf16.msra.mxu1 %v2249_v10  ;;  %3277 = vmatprep.mubr.msk.bf16.mxu1 %vm3630_vm2, %v3629_v35  ;;  %v2242_v12 = vpack.c.bf16 %v2241_v57, %v2239_v11  ;;  %v3591_v37 = vpop.eup %3590 }
0x11e9   :  { %3287 = vmatprep.subr.bf16.mxu1 %v3629_v35  ;;  %v2366_v16 = vmul.f32 %v3591_v37, %v4301_v43 }
0x11ef   :  { %3278 = vmatmul.mubr.msk.bf16.vlgmr.msra.gmra.mrb[52].mxu1 %vm963_vm6, %v2242_v12 }
0x11f0   :  { %3289 = vmatprep.mubr.msk.bf16.mxu1 %vm3630_vm2, %v3629_v35 }
0x120e   :  { %v2364_v13 = vpop.xlane.xlu1 %2363 }
0x120f   :  { %3592 = vrcp.f32 %v2364_v13 }
0x1212   :  { %v2371_v33 = vpop.permute.xlu1 %2370 }
0x1213   :  { %v2376_v34 = vsel %vm991_vm4, %v2371_v33, 0 }
0x1214   :  { %3288 = vmatpush3.bf16.msra.mxu1 %v2376_v34 }
0x1215   :  { %3305 = vmatprep.subr.bf16.mxu1 %v3629_v35 }
0x1219   :  { %v3593_v0 = vpop.eup %3592 }
0x121a   :  { %v2368_v17 = vmul.f32 %v3593_v0, %v3577_v48 }
0x121c   :  { %v2369_v62 = vpack.c.bf16 %v2368_v17, %v2366_v16  ;;  %v3498_v16 = vld [vmem:[%s4476_s2 + $0x1c0] ss:$8 sps:$4 sm:$0xff]   ;;  %v3499_v17 = vld [vmem:[%s4476_s2 + $0x1d0] ss:$8 sps:$4 sm:$0xff]  }
0x121e   :  { %3290 = vmatmul.mubr.msk.bf16.vlgmr.msra.gmra.mrb[56].mxu1 %vm963_vm6, %v2369_v62  ;;  %v3500_v62 = vld [vmem:[%s4476_s2 + $0x1e0] ss:$8 sps:$4 sm:$0xff]  }
0x121f   :  { %3313 = vmatprep.mubr.msk.bf16.mxu1 %vm3630_vm2, %v3629_v35  ;;  %3306 = vmatpush3.bf16.msra.mxu1 %v3498_v16 }
0x1220   :  { %3307 = vmatprep.subr.bf16.mxu1 %v3629_v35 }
0x1223   :  { %3308 = vmatpush3.bf16.msra.mxu1 %v3499_v17 }
0x1224   :  { %3309 = vmatprep.subr.bf16.mxu1 %v3629_v35 }
0x1227   :  { %3310 = vmatpush3.bf16.msra.mxu1 %v3500_v62 }
0x1228   :  { %3311 = vmatprep.subr.bf16.mxu1 %v3629_v35 }
0x12b2   :  { %v2030_v18 = vpop.f32.mrb[44].mxu1 }
0x12b3   :  { %v3255_v19 = vpop.f32.mrb[45].mxu1 }
0x12b4   :  { %v2033_v21 = vpop.f32.mrb[46].mxu1 }
0x12b5   :  { %v3256_v22 = vpop.f32.mrb[47].mxu1 }
0x12ba   :  { %v2158_v24 = vpop.f32.mrb[48].mxu1 }
0x12bb   :  { %v3267_v25 = vpop.f32.mrb[49].mxu1 }
0x12bc   :  { %v2161_v26 = vpop.f32.mrb[50].mxu1 }
0x12bd   :  { %v3375_v1 = vpack.i.bf16 %v2161_v26, %v2158_v24  ;;  %v3268_v28 = vpop.f32.mrb[51].mxu1 }
0x12be   :  { %v2523_v28 = vld [vmem:[%s4477_s3 + $0x40] ss:$0 sm:$0xff] }
0x12bf   :  { %3376 = vrot.lane.b32.xlu1 %v3375_v1, %s3637_s25 }
0x12c2   :  { %v2285_v30 = vpop.f32.mrb[52].mxu1 }
0x12c3   :  { %v3279_v31 = vpop.f32.mrb[53].mxu1 }
0x12c4   :  { %v2288_v32 = vpop.f32.mrb[54].mxu1  ;;  %v2524_v31 = vld [vmem:[%s4477_s3 + $0x41] ss:$0 sm:$0xff] }
0x12c5   :  { %v3380_v36 = vpack.i.bf16 %v2288_v32, %v2285_v30  ;;  %v3280_v38 = vpop.f32.mrb[55].mxu1 }
0x12c7   :  { %3381 = vrot.lane.b32.xlu0 %v3380_v36, %s3633_s18 }
0x12f1   :  { %v2412_v40 = vpop.f32.mrb[56].mxu1 }
0x12f2   :  { %v3291_v42 = vpop.f32.mrb[57].mxu1 }
0x12f3   :  { %v2415_v43 = vpop.f32.mrb[58].mxu1  ;;  %v3503_v42 = vld [vmem:[%s4476_s2 + $0x210] ss:$8 sps:$4 sm:$0xff]  }
0x12f4   :  { %v3385_v45 = vpack.i.bf16 %v2415_v43, %v2412_v40  ;;  %v3292_v14 = vpop.f32.mrb[59].mxu1  ;;  %v3502_v40 = vld [vmem:[%s4476_s2 + $0x200] ss:$8 sps:$4 sm:$0xff]  }
0x12f5   :  { %v3504_v43 = vld [vmem:[%s4476_s2 + $0x220] ss:$8 sps:$4 sm:$0xff]  }
0x12f6   :  { %3386 = vrot.lane.b32.xlu1 %v3385_v45, %s3636_s24  ;;  %v3505_v45 = vld [vmem:[%s4476_s2 + $0x230] ss:$8 sps:$4 sm:$0xff]   ;;  %v3506_v14 = vld [vmem:[%s4476_s2 + $0x240] ss:$8 sps:$4 sm:$0xff]  }
0x1331   :  { %v3377_v46 = vpop.permute.xlu1 %3376 }
0x1332   :  { %v3379_v48 = vunpack.i.h.bf16 %v3377_v46  ;;  %v3378_v50 = vunpack.i.l.bf16 %v3377_v46  ;;  %v3507_v46 = vld [vmem:[%s4476_s2 + $0x250] ss:$8 sps:$4 sm:$0xff]  }
0x1334   :  { %v2444_v56 = vsel %vm903_vm3, %v2033_v21, %v3379_v48  ;;  %v2443_v58 = vsel %vm903_vm3, %v2030_v18, %v3378_v50  ;;  %v3501_v18 = vld [vmem:[%s4476_s2 + $0x1f0] ss:$8 sps:$4 sm:$0xff]   ;;  %v2556_v50 = vld [vmem:[%s4477_s3 + $0x42] ss:$0 sm:$0xff] }
0x1335   :  { %3312 = vmatpush3.bf16.msra.mxu1 %v3501_v18  ;;  %v3509_v48 = vld [vmem:[%s4476_s2 + $0x270] ss:$8 sps:$4 sm:$0xff]  }
0x1336   :  { %3337 = vmatprep.subr.bf16.mxu1 %v3629_v35 }
0x1339   :  { %v3382_v47 = vpop.permute.xlu0 %3381 }
0x133a   :  { %v3384_v51 = vunpack.i.h.bf16 %v3382_v47  ;;  %v3383_v53 = vunpack.i.l.bf16 %v3382_v47  ;;  %v3508_v47 = vld [vmem:[%s4476_s2 + $0x260] ss:$8 sps:$4 sm:$0xff]  }
0x133c   :  { %v2445_v60 = vsel %vm1444_vm8, %v2443_v58, %v3383_v53  ;;  %v2446_v44 = vsel %vm1444_vm8, %v2444_v56, %v3384_v51 }
0x1368   :  { %v3387_v54 = vpop.permute.xlu1 %3386 }
0x1369   :  { %v3389_v52 = vunpack.i.h.bf16 %v3387_v54  ;;  %v3388_v59 = vunpack.i.l.bf16 %v3387_v54 }
0x136b   :  { %v2447_v41 = vsel %vm1447_vm9, %v2445_v60, %v3388_v59  ;;  %v2448_v61 = vsel %vm1447_vm9, %v2446_v44, %v3389_v52 }
0x136c   :  { %v2449_v63 = vpack.c.bf16 %v2448_v61, %v2447_v41 }
0x136e   :  { %3302 = vmatmul.mubr.msk.bf16.vlgmr.msra.gmra.mrb[40].mxu0 %vm765_vm0, %v2449_v63 }
0x136f   :  { %3333 = vmatprep.mubr.msk.bf16.mxu0 %vm3630_vm2, %v3629_v35  ;;  %3318 = vmatpush3.bf16.msra.mxu0 %v3502_v40 }
0x1370   :  { %3319 = vmatprep.subr.bf16.mxu0 %v3629_v35 }
0x1373   :  { %3320 = vmatpush3.bf16.msra.mxu0 %v3503_v42 }
0x1374   :  { %3321 = vmatprep.subr.bf16.mxu0 %v3629_v35 }
0x1377   :  { %3322 = vmatpush3.bf16.msra.mxu0 %v3504_v43 }
0x1378   :  { %3323 = vmatprep.subr.bf16.mxu0 %v3629_v35 }
0x137b   :  { %3324 = vmatpush3.bf16.msra.mxu0 %v3505_v45 }
0x137c   :  { %3325 = vmatprep.subr.bf16.mxu0 %v3629_v35 }
0x137f   :  { %3326 = vmatpush3.bf16.msra.mxu0 %v3506_v14 }
0x1380   :  { %3327 = vmatprep.subr.bf16.mxu0 %v3629_v35 }
0x1383   :  { %3328 = vmatpush3.bf16.msra.mxu0 %v3507_v46 }
0x1384   :  { %3329 = vmatprep.subr.bf16.mxu0 %v3629_v35 }
0x1387   :  { %3330 = vmatpush3.bf16.msra.mxu0 %v3508_v47 }
0x1388   :  { %3331 = vmatprep.subr.bf16.mxu0 %v3629_v35 }
0x138b   :  { %3332 = vmatpush3.bf16.msra.mxu0 %v3509_v48 }
0x1441   :  { %v2511_v49 = vpop.f32.mrb[40].mxu0 }
0x1442   :  { %v2518_v2 = vadd.f32 %v2511_v49, %v4193_v20  ;;  %v3303_v3 = vpop.f32.mrb[41].mxu0 }
0x1443   :  { %v2514_v5 = vpop.f32.mrb[42].mxu0 }
0x1444   :  { %v4363_v6 = vadd.f32 %v2520_v15, %v2518_v2  ;;  %v2519_v7 = vadd.f32 %v2514_v5, %v4196_v23  ;;  %v3304_v8 = vpop.f32.mrb[43].mxu0 }
0x1446   :  { %v2525_v55 = vsel %vm765_vm0, %v4363_v6, 0.0  ;;  %v2522_v9 = vadd.f32 %v2520_v15, %v2519_v7 }
0x1447   :  { %2526 = vadd.xlane.f32.xlu0 %v2525_v55 }
0x1448   :  { %v2528_v10 = vsel %vm769_vm1, %v2522_v9, 0.0 }
0x1449   :  { %2529 = vadd.xlane.f32.xlu1 %v2528_v10 }
0x14d4   :  { %v2527_v11 = vpop.xlane.xlu0 %2526 }
0x14d5   :  { %v2531_v57 = vmul.f32 0.015625, %v2527_v11 }
0x14d6   :  { %v2530_v12 = vpop.xlane.xlu1 %2529 }
0x14d7   :  { %v2533_v20 = vsub.f32 %v4363_v6, %v2531_v57  ;;  %v2532_v13 = vmul.f32 0.015625, %v2530_v12 }
0x14d9   :  { %v2534_v33 = vsub.f32 %v2522_v9, %v2532_v13  ;;  %v2535_v34 = vmul.f32 %v2533_v20, %v2533_v20  ;;  %v2733_v13 = vld [vmem:[%s4477_s3 + $0x43] ss:$0 sm:$0xff] }
0x14db   :  { %v2537_v37 = vsel %vm765_vm0, %v2535_v34, 0.0  ;;  %v2536_v23 = vmul.f32 %v2534_v33, %v2534_v33 }
0x14dc   :  { %2538 = vadd.xlane.f32.xlu0 %v2537_v37 }
0x14dd   :  { %v2540_v0 = vsel %vm769_vm1, %v2536_v23, 0.0 }
0x14e0   :  { %2541 = vadd.xlane.f32.xlu0 %v2540_v0 }
0x1569   :  { %v2539_v19 = vpop.xlane.xlu0 %2538 }
0x156a   :  { %v2543_v21 = vmul.f32 0.015625, %v2539_v19 }
0x156c   :  { %v2545_v22 = vadd.f32 1e-06, %v2543_v21 }
0x156d   :  { %v2542_v24 = vpop.xlane.xlu0 %2541 }
0x156e   :  { %3594 = vrsqrt.f32 %v2545_v22  ;;  %v2544_v25 = vmul.f32 0.015625, %v2542_v24 }
0x1570   :  { %v2546_v26 = vadd.f32 1e-06, %v2544_v25  ;;  %v3511_v25 = vld [vmem:[%s4476_s2 + $0x290] ss:$8 sps:$4 sm:$0xff]  }
0x1572   :  { %3596 = vrsqrt.f32 %v2546_v26  ;;  %v3512_v26 = vld [vmem:[%s4476_s2 + $0x2a0] ss:$8 sps:$4 sm:$0xff]  }
0x1578   :  { %v3595_v27 = vpop.eup %3594 }
0x1579   :  { %v2549_v1 = vmul.f32 %v3595_v27, %v2533_v20  ;;  %v3513_v27 = vld [vmem:[%s4476_s2 + $0x2b0] ss:$8 sps:$4 sm:$0xff]  }
0x157b   :  { %v2551_v30 = vmul.f32 %v2549_v1, %v2523_v28 }
0x157c   :  { %v3597_v29 = vpop.eup %3596 }
0x157d   :  { %v2550_v4 = vmul.f32 %v3597_v29, %v2534_v33  ;;  %v2553_v36 = vadd.f32 %v2551_v30, %v2524_v31 }
0x157f   :  { %v2552_v32 = vmul.f32 %v2550_v4, %v2523_v28  ;;  %v2740_v4 = vld [vmem:[%s4477_s3 + $0x44] ss:$0 sm:$0xff] }
0x1581   :  { %v2554_v38 = vadd.f32 %v2552_v32, %v2524_v31  ;;  %v2741_v32 = vld [vmem:[%s4477_s3 + $0x45] ss:$0 sm:$0xff] }
0x1583   :  { %v2555_v39 = vpack.c.bf16 %v2554_v38, %v2553_v36 }
0x1585   :  { %3314 = vmatmul.mubr.msk.bf16.vlgmr.msra.gmra.mrb[60].mxu1 %vm765_vm0, %v2555_v39 }
0x1586   :  { %3345 = vmatprep.mubr.msk.bf16.mxu1 %vm3630_vm2, %v3629_v35 }
0x1658   :  { %v2618_v51 = vpop.f32.mrb[60].mxu1 }
0x1659   :  { %v2619_v53 = vadd.f32 %v2618_v51, %v2556_v50  ;;  %v3315_v54 = vpop.f32.mrb[61].mxu1 }
0x165a   :  { %v2621_v56 = vpop.f32.mrb[62].mxu1 }
0x165b   :  { %v2627_v58 = vmul.f32 0.044715, %v2619_v53  ;;  %v2622_v52 = vadd.f32 %v2621_v56, %v2556_v50  ;;  %v3316_v59 = vpop.f32.mrb[63].mxu1  ;;  %v2625_v55 = vmul.f32 0.5, %v2619_v53 }
0x165d   :  { %v2629_v60 = vmul.f32 %v2627_v58, %v2619_v53  ;;  %v2628_v44 = vmul.f32 0.044715, %v2622_v52  ;;  %v2626_v9 = vmul.f32 0.5, %v2622_v52 }
0x165f   :  { %v2631_v41 = vmul.f32 %v2629_v60, %v2619_v53  ;;  %v2630_v61 = vmul.f32 %v2628_v44, %v2622_v52 }
0x1661   :  { %v2633_v63 = vadd.f32 %v2631_v41, %v2619_v53  ;;  %v2632_v49 = vmul.f32 %v2630_v61, %v2622_v52 }
0x1663   :  { %v2635_v15 = vmul.f32 0.7978846, %v2633_v63  ;;  %v2634_v2 = vadd.f32 %v2632_v49, %v2622_v52 }
0x1665   :  { %3598 = vtanh.f32 %v2635_v15  ;;  %v2636_v3 = vmul.f32 0.7978846, %v2634_v2 }
0x1667   :  { %3600 = vtanh.f32 %v2636_v3 }
0x166f   :  { %v3599_v5 = vpop.eup %3598 }
0x1670   :  { %v2639_v7 = vadd.f32 1.0, %v3599_v5 }
0x1671   :  { %v3601_v8 = vpop.eup %3600 }
0x1672   :  { %v2640_v10 = vadd.f32 1.0, %v3601_v8  ;;  %v2641_v11 = vmul.f32 %v2639_v7, %v2625_v55 }
0x1674   :  { %v2642_v57 = vmul.f32 %v2640_v10, %v2626_v9 }
0x1676   :  { %v2643_v12 = vpack.c.bf16 %v2642_v57, %v2641_v11 }
0x1678   :  { %3334 = vmatmul.mubr.bf16.vlgmr.msra.gmra.mrb[44].mxu0 %v2643_v12 }
0x174b   :  { %v2726_v20 = vpop.f32.mrb[44].mxu0 }
0x174c   :  { %v2732_v33 = vadd.f32 %v2726_v20, %v4363_v6  ;;  %v3335_v34 = vpop.f32.mrb[45].mxu0  ;;  %v3510_v6 = vld [vmem:[%s4476_s2 + $0x280] ss:$8 sps:$4 sm:$0xff]  }
0x174d   :  { %v2729_v37 = vpop.f32.mrb[46].mxu0  ;;  %3338 = vmatpush3.bf16.msra.mxu1 %v3510_v6 }
0x174e   :  { %v2734_v23 = vadd.f32 %v2733_v13, %v2732_v33  ;;  %v3336_v0 = vpop.f32.mrb[47].mxu0  ;;  %3339 = vmatprep.subr.bf16.mxu1 %v3629_v35 }
0x1750   :  { %v2736_v16 = vrot.slane %v2734_v23, 4 }
0x1751   :  { %3340 = vmatpush3.bf16.msra.mxu1 %v3511_v25 }
0x1752   :  { %v2739_v17 = vsel %vm2738_vm10, %v2734_v23, %v2736_v16  ;;  %3341 = vmatprep.subr.bf16.mxu1 %v3629_v35 }
0x1753   :  { %v2742_v62 = vsel %vm769_vm1, %v2739_v17, 0.0 }
0x1754   :  { %2743 = vadd.xlane.f32.xlu0 %v2742_v62 }
0x1755   :  { %3342 = vmatpush3.bf16.msra.mxu1 %v3512_v26 }
0x1756   :  { %3343 = vmatprep.subr.bf16.mxu1 %v3629_v35  ;;  %v2766_v35 = vld [vmem:[%s4477_s3 + $0x46] ss:$0 sm:$0xff] }
0x1759   :  { %3344 = vmatpush3.bf16.msra.mxu1 %v3513_v27 }
0x17e1   :  { %v2744_v18 = vpop.xlane.xlu0 %2743 }
0x17e2   :  { %v2745_v19 = vmul.f32 0.015625, %v2744_v18 }
0x17e4   :  { %v2746_v21 = vsub.f32 %v2739_v17, %v2745_v19 }
0x17e6   :  { %v2747_v22 = vmul.f32 %v2746_v21, %v2746_v21 }
0x17e8   :  { %v2748_v24 = vsel %vm769_vm1, %v2747_v22, 0.0 }
0x17e9   :  { %2749 = vadd.xlane.f32.xlu1 %v2748_v24 }
0x1876   :  { %v2750_v1 = vpop.xlane.xlu1 %2749 }
0x1877   :  { %v2751_v28 = vmul.f32 0.015625, %v2750_v1 }
0x1879   :  { %v2752_v29 = vadd.f32 1e-06, %v2751_v28 }
0x187b   :  { %3602 = vrsqrt.f32 %v2752_v29 }
0x1885   :  { %v3603_v30 = vpop.eup %3602 }
0x1886   :  { %v2754_v31 = vmul.f32 %v3603_v30, %v2746_v21 }
0x1888   :  { %v2755_v36 = vmul.f32 %v2754_v31, %v2740_v4 }
0x188a   :  { %v2756_v38 = vadd.f32 %v2755_v36, %v2741_v32 }
0x188c   :  { %v2757_v39 = vpack.c.bf16 %v2756_v38, %v2756_v38 }
0x188e   :  { %3346 = vmatmul.mubr.msk.bf16.vlgmr.msra.gmra.mrb[64].mxu1 %vm765_vm0, %v2757_v39 }
0x1961   :  { %v2828_v40 = vpop.f32.mrb[64].mxu1 }
0x1962   :  { %v2829_v42 = vadd.f32 %v2828_v40, %v2766_v35  ;;  %v3347_v43 = vpop.f32.mrb[65].mxu1 }
0x1963   :  { %v2831_v45 = vpop.f32.mrb[66].mxu1 }
0x1964   :  { %2834 = vst [vmem:[#allocation2] sm:$0x3] %v2829_v42  ;;  %v3348_v14 = vpop.f32.mrb[67].mxu1 }
0x1965   :  { %3615 = shalt.err (!%p3612_p4)
}
0x1966   :  { %s3616_s3 = scalar_lea.hbm %s4478_s4, 32 }
0x1967   :  { %p3617_p5 = scmp.ne.s32.totalorder %s4478_s4, %s3616_s3  ;;  %p3620_p6 = scmp.lt.u32.totalorder %s3616_s3, %s4478_s4 }
0x1969   :  { %p3622_p7 = pnand %p3620_p6, %p3617_p5 }
0x196b   :  { %3625 = shalt.err (!%p3622_p7)
}
0x196c   :  { %2844 = dma.vmem_to_hbm [thread:$0]  %s2842_s16, 32, %s4478_s4, [#allocation3]  }
0x196d   :  { %3626 = dma.done.wait [#allocation3], 32  }
0x196e   :  { %3627 = vsyncadd [#allocation3], 4294967264 }
0x196f   :  { %2848 = vsyncpa [#allocation3], 1 }

</bundles_post_ra>
